<compile_context>
chip_gen: v5e
topology: v5e:2x2
jax: 0.10.0
libtpu: 0.0.40
codegen_flags: <defaults>
</compile_context>

<pallas_src>
import functools

import jax
import jax.numpy as jnp
from jax import lax
from jax.experimental import pallas as pl
from jax.experimental.pallas import tpu as pltpu


# ------------------------------------------------------------------ fused kernel
def _dpcnn_kernel(xim_ref, wr_ref, br_ref, we_ref, be_ref, wl_ref, bl_ref,
                  o_ref, scr_ref, *, bt, h0, s0):
    """One batch-block of the full DPCNN forward.

    xim_ref : (1, bt*s0, Kr) bf16  im2col'd region-conv input, slab layout
    wr_ref  : (Kr, F)  bf16        region conv weight, (kh, d)-major, zero-padded K
    we_ref  : (3F, F)  bf16        stacked ewc weight [W_{h-1}; W_h; W_{h+1}]
    wl_ref  : (F, OP)  bf16        linear weight, lane-padded output
    br/be/bl: f32 biases;  o_ref: (1, bt, OP) f32;  scr_ref: (bt*s0, F) f32
    """
    f32 = jnp.float32
    F = we_ref.shape[1]
    br = br_ref[...]                                   # (1, F)
    be = be_ref[...]                                   # (1, F)
    neg_inf = jnp.float32(-jnp.inf)

    # ---- region conv: Conv2d(1, F, (3, D)) == ONE (bt*s0, K) @ (K, F) pass ----
    feat = jnp.dot(xim_ref[0], wr_ref[...],
                   preferred_element_type=f32) + br    # (bt*s0, F) f32
    # Rows h >= h0 inside each per-sample slab are don't-care from here on.

    # ---- ewc: Conv2d(F, F, 3, padding='same') on a W=1 tensor == 1-D conv
    #      along H, done as one (n, 3F) @ (3F, F) matmul for the whole slab. ----
    def ewc(a, h, row_mod):
        if h == 1:                       # only the centre tap sees real data
            return jnp.dot(a.astype(jnp.bfloat16), we_ref[F:2 * F, :],
                           preferred_element_type=f32) + be
        zero = jnp.zeros((1, F), f32)
        # Register-level sublane shifts (no VMEM round trip); concat chosen
        # over pltpu.roll for maximum lowering robustness -- both stay in regs.
        down = jnp.concatenate([zero, a[:-1, :]], axis=0)      # a[r-1]
        up = jnp.concatenate([a[1:, :], zero], axis=0)         # a[r+1]
        # Per-sample zero 'same' padding; also blocks cross-sample leakage.
        down = jnp.where(row_mod == 0, 0.0, down)
        up = jnp.where(row_mod == h - 1, 0.0, up)
        lhs = jnp.concatenate([down, a, up], axis=-1).astype(jnp.bfloat16)
        return jnp.dot(lhs, we_ref[...], preferred_element_type=f32) + be

    def block(a, h, s):                  # x += ewc(relu(ewc(relu(x))))
        row_mod = None
        if h > 1:                        # hoisted once per level (reused twice)
            n = a.shape[0]
            row_mod = lax.broadcasted_iota(jnp.int32, (n, 1), 0) & (s - 1)
        t = ewc(jnp.maximum(a, 0.0), h, row_mod)
        t = ewc(jnp.maximum(t, 0.0), h, row_mod)
        return a + t

    # ---- MaxPool2d((3,1), stride=2, padding=(1,0)) with -inf padding:
    #      one batched pass per level via stride-2 sublane reads. ----
    def maxpool(a, h_in, s_in):
        n_in = a.shape[0]
        s_out, n_out = s_in // 2, n_in // 2
        h_out = (h_in - 1) // 2 + 1
        scr_ref[0:n_in, :] = a
        even = scr_ref[pl.ds(0, n_out, stride=2), :]           # a[2i]
        odd = scr_ref[pl.ds(1, n_out, stride=2), :]            # a[2i+1]
        if s_out == 1:                   # h_in == 2: single window max(a0, a1)
            return jnp.maximum(even, odd), h_out, s_out
        i_out = lax.broadcasted_iota(jnp.int32, (n_out, 1), 0) & (s_out - 1)
        prev = jnp.concatenate([jnp.full((1, F), neg_inf, f32),
                                odd[:-1, :]], axis=0)          # a[2i-1]
        prev = jnp.where(i_out == 0, neg_inf, prev)            # top -inf pad
        nxt = jnp.where(2 * i_out + 1 >= h_in, neg_inf, odd)   # bottom -inf pad
        return jnp.maximum(jnp.maximum(even, prev), nxt), h_out, s_out

    h, s = h0, s0                        # static Python ints -> unrolled pyramid
    feat = block(feat, h, s)
    while h >= 2:                        # PyTorch: while x.size()[2] >= 2
        feat, h, s = maxpool(feat, h, s)
        feat = block(feat, h, s)

    # ---- final Linear: one batched (bt, F) @ (F, OP) matmul (s == 1 here),
    #      lane-dense full-block store. ----
    o_ref[0] = (jnp.dot(feat.astype(jnp.bfloat16), wl_ref[...],
                        preferred_element_type=f32) + bl_ref[...])


# ------------------------------------------------------------------ wrapper
def dpcnn_forward(x, params, output_dim, *, block_b=None):
    """x: (B, L, D) float32 -> (B, output_dim) float32."""
    wr, br, we, be, wl, bl = params
    B, L, D = x.shape
    F = we.shape[1]
    Kr = wr.shape[0]                                   # lane-padded 3*D
    OP = wl.shape[1]                                   # lane-padded output width
    assert L >= 3, "DPCNN needs seq_len >= 3"
    H0 = L - 2
    S0 = 1 << max(H0 - 1, 0).bit_length()              # next power of two >= H0

    if block_b is None:
        fill = max(1, 256 // S0)                       # ~256 M-rows (v6e/v7x MXU)
        block_b = max(1, min(fill, max(1, (B + 1) // 2), B))   # >=2 steps (v7x)
    G = pl.cdiv(B, block_b)
    B_pad = G * block_b

    # im2col + batch/lane padding done once in XLA; kernel input is bf16.
    xb = x.astype(jnp.bfloat16)
    if B_pad != B:
        xb = jnp.concatenate(
            [xb, jnp.zeros((B_pad - B, L, D), xb.dtype)], axis=0)
    cols = jnp.concatenate([xb[:, 0:H0], xb[:, 1:H0 + 1], xb[:, 2:H0 + 2]],
                           axis=-1)                    # (B_pad, H0, 3D)
    xim = jnp.zeros((B_pad, S0, Kr), jnp.bfloat16)
    xim = xim.at[:, :H0, :3 * D].set(cols)
    xim = xim.reshape(G, block_b * S0, Kr)

    kernel = functools.partial(_dpcnn_kernel, bt=block_b, h0=H0, s0=S0)
    out = pl.pallas_call(
        kernel,
        out_shape=jax.ShapeDtypeStruct((G, block_b, OP), jnp.float32),
        grid=(G,),
        in_specs=[
            pl.BlockSpec((1, block_b * S0, Kr), lambda i: (i, 0, 0)),  # im2col x
            pl.BlockSpec((Kr, F), lambda i: (0, 0)),       # region weight bf16
            pl.BlockSpec((1, F), lambda i: (0, 0)),        # region bias f32
            pl.BlockSpec((3 * F, F), lambda i: (0, 0)),    # stacked ewc weight bf16
            pl.BlockSpec((1, F), lambda i: (0, 0)),        # ewc bias f32
            pl.BlockSpec((F, OP), lambda i: (0, 0)),       # linear weight bf16
            pl.BlockSpec((1, OP), lambda i: (0, 0)),       # linear bias f32
        ],
        out_specs=pl.BlockSpec((1, block_b, OP), lambda i: (i, 0, 0)),
        scratch_shapes=[pltpu.VMEM((block_b * S0, F), jnp.float32)],
        compiler_params=pltpu.CompilerParams(
            dimension_semantics=("parallel",)),
    )(xim, wr, br, we, be, wl, bl)
    return out.reshape(B_pad, OP)[:B, :output_dim]


# ------------------------------------------------------------------ params
def init_params(key, input_dim, output_dim, num_filters):
    D, F, O = input_dim, num_filters, output_dim
    # The kernel's lane-concat / stacked-weight layout assumes lane-aligned F.
    # (PyTorch default num_filters=250 would need padding to 256.)
    assert F % 128 == 0, "num_filters must be a multiple of 128 (lane width)"
    Kr = ((3 * D + 127) // 128) * 128                  # lane-padded im2col depth
    OP = ((O + 127) // 128) * 128                      # lane-dense output width
    ks = jax.random.split(key, 6)
    # PyTorch-shaped parameters (deterministic synthetic init).
    w_region = jax.random.normal(ks[0], (F, 1, 3, D), jnp.float32) * 0.05   # Conv2d(1,F,(3,D))
    b_region = jax.random.normal(ks[1], (F,), jnp.float32) * 0.05
    w_ewc = jax.random.normal(ks[2], (F, F, 3, 3), jnp.float32) * 0.02      # Conv2d(F,F,3,'same')
    b_ewc = jax.random.normal(ks[3], (F,), jnp.float32) * 0.02
    w_lin = jax.random.normal(ks[4], (O, F), jnp.float32) * 0.05            # Linear(F,O)
    b_lin = jax.random.normal(ks[5], (O,), jnp.float32) * 0.05

    # Repack for the fused kernel (MXU operands bf16, biases f32).
    wr = (jnp.zeros((Kr, F), jnp.float32)
          .at[:3 * D, :].set(w_region.reshape(F, 3 * D).T)).astype(jnp.bfloat16)
    br = b_region.reshape(1, F)
    # Only the kw=1 column of the 3x3 ewc kernel touches real data on a W=1
    # tensor; stack [W_{h-1}; W_h; W_{h+1}] for the single K=3F matmul.
    we = jnp.concatenate([w_ewc[:, :, 0, 1].T,
                          w_ewc[:, :, 1, 1].T,
                          w_ewc[:, :, 2, 1].T], axis=0).astype(jnp.bfloat16)
    be = b_ewc.reshape(1, F)
    wl = (jnp.zeros((F, OP), jnp.float32)
          .at[:, :O].set(w_lin.T)).astype(jnp.bfloat16)
    bl = jnp.zeros((1, OP), jnp.float32).at[:, :O].set(b_lin.reshape(1, O))
    return (wr, br, we, be, wl, bl)


if __name__ == "__main__":
    # num_filters kept at 128 (lane-aligned) instead of the PyTorch default 250.
    B, L, D, F, O = 4, 16, 32, 128, 16   # batch, seq_len, input_dim, num_filters, output_dim
    key = jax.random.PRNGKey(0)
    kx, kp = jax.random.split(key)
    x = jax.random.normal(kx, (B, L, D), jnp.float32)
    params = init_params(kp, D, O, F)

    out = jax.block_until_ready(dpcnn_forward(x, params, O))
    assert out.shape == (B, O), out.shape
    assert bool(jnp.all(jnp.isfinite(out)))
    print("KERNEL_OK")
</pallas_src>

<mosaic_0001>
module attributes {stable_mosaic.version = 11 : i64} {
  func.func @_dpcnn_kernel(%arg0: i32, %arg1: memref<1x32x128xbf16, #tpu.memory_space<vmem>>, %arg2: memref<128x128xbf16, #tpu.memory_space<vmem>>, %arg3: memref<1x128xf32, #tpu.memory_space<vmem>>, %arg4: memref<384x128xbf16, #tpu.memory_space<vmem>>, %arg5: memref<1x128xf32, #tpu.memory_space<vmem>>, %arg6: memref<128x128xbf16, #tpu.memory_space<vmem>>, %arg7: memref<1x128xf32, #tpu.memory_space<vmem>>, %arg8: memref<1x2x128xf32, #tpu.memory_space<vmem>>, %arg9: memref<32x128xf32, #tpu.memory_space<vmem>>) attributes {dimension_semantics = [#tpu.dimension_semantics<parallel>], iteration_bounds = array<i64: 2>, scalar_prefetch = 0 : i64, scratch_operands = 1 : i64, tpu.core_type = #tpu.core_type<tc>, window_params = [{transform_indices = @transform_0, window_bounds = array<i64: 1, 32, 128>}, {pipeline_mode = #tpu.pipeline_mode<synchronous>, transform_indices = @transform_1, window_bounds = array<i64: 128, 128>}, {pipeline_mode = #tpu.pipeline_mode<synchronous>, transform_indices = @transform_2, window_bounds = array<i64: 1, 128>}, {pipeline_mode = #tpu.pipeline_mode<synchronous>, transform_indices = @transform_3, window_bounds = array<i64: 384, 128>}, {pipeline_mode = #tpu.pipeline_mode<synchronous>, transform_indices = @transform_4, window_bounds = array<i64: 1, 128>}, {pipeline_mode = #tpu.pipeline_mode<synchronous>, transform_indices = @transform_5, window_bounds = array<i64: 128, 128>}, {pipeline_mode = #tpu.pipeline_mode<synchronous>, transform_indices = @transform_6, window_bounds = array<i64: 1, 128>}, {transform_indices = @transform_7, window_bounds = array<i64: 1, 2, 128>}]} {
    %c0 = arith.constant 0 : index
    %c0_0 = arith.constant 0 : index
    %0 = vector.load %arg3[%c0, %c0_0] : memref<1x128xf32, #tpu.memory_space<vmem>>, vector<1x128xf32>
    %c0_1 = arith.constant 0 : index
    %c0_2 = arith.constant 0 : index
    %1 = vector.load %arg5[%c0_1, %c0_2] : memref<1x128xf32, #tpu.memory_space<vmem>>, vector<1x128xf32>
    %c0_3 = arith.constant 0 : index
    %c0_4 = arith.constant 0 : index
    %c0_5 = arith.constant 0 : index
    %2 = vector.load %arg1[%c0_3, %c0_4, %c0_5] : memref<1x32x128xbf16, #tpu.memory_space<vmem>>, vector<1x32x128xbf16>
    %3 = vector.shape_cast %2 : vector<1x32x128xbf16> to vector<32x128xbf16>
    %c0_6 = arith.constant 0 : index
    %c0_7 = arith.constant 0 : index
    %4 = vector.load %arg2[%c0_6, %c0_7] : memref<128x128xbf16, #tpu.memory_space<vmem>>, vector<128x128xbf16>
    %cst = arith.constant dense<0.000000e+00> : vector<32x128xf32>
    %5 = tpu.matmul %3, %4, %cst {dimension_numbers = #tpu.dot_dimension_numbers<[1], [0], [0], [1], [0, 0, 1, 1], [], []>} : vector<32x128xbf16>, vector<128x128xbf16>, vector<32x128xf32> -> vector<32x128xf32>
    %6 = vector.broadcast %0 : vector<1x128xf32> to vector<32x128xf32>
    %7 = arith.addf %5, %6 : vector<32x128xf32>
    %8 = tpu.iota {dimensions = array<i32: 0>} : vector<32x1xi32>
    %c15_i32 = arith.constant 15 : i32
    %9 = vector.broadcast %c15_i32 : i32 to vector<32x1xi32>
    %10 = arith.andi %8, %9 : vector<32x1xi32>
    %cst_8 = arith.constant 0.000000e+00 : f32
    %11 = vector.broadcast %cst_8 : f32 to vector<32x128xf32>
    %12 = arith.maximumf %7, %11 : vector<32x128xf32>
    %cst_9 = arith.constant 0.000000e+00 : f32
    %13 = vector.broadcast %cst_9 : f32 to vector<1x128xf32>
    %14 = vector.extract_strided_slice %12 {offsets = [0, 0], sizes = [31, 128], strides = [1, 1]} : vector<32x128xf32> to vector<31x128xf32>
    %15 = tpu.concatenate %13, %14 in 0 : vector<1x128xf32>, vector<31x128xf32> -> vector<32x128xf32>
    %16 = vector.extract_strided_slice %12 {offsets = [1, 0], sizes = [31, 128], strides = [1, 1]} : vector<32x128xf32> to vector<31x128xf32>
    %17 = tpu.concatenate %16, %13 in 0 : vector<31x128xf32>, vector<1x128xf32> -> vector<32x128xf32>
    %c0_i32 = arith.constant 0 : i32
    %18 = vector.broadcast %c0_i32 : i32 to vector<32x1xi32>
    %19 = arith.cmpi eq, %10, %18 : vector<32x1xi32>
    %cst_10 = arith.constant 0.000000e+00 : f32
    %20 = vector.shape_cast %19 : vector<32x1xi1> to vector<32x1xi1>
    %21 = vector.broadcast %20 : vector<32x1xi1> to vector<32x128xi1>
    %22 = vector.broadcast %cst_10 : f32 to vector<32x128xf32>
    %23 = arith.select %21, %22, %15 : vector<32x128xi1>, vector<32x128xf32>
    %c13_i32 = arith.constant 13 : i32
    %24 = vector.broadcast %c13_i32 : i32 to vector<32x1xi32>
    %25 = arith.cmpi eq, %10, %24 : vector<32x1xi32>
    %cst_11 = arith.constant 0.000000e+00 : f32
    %26 = vector.shape_cast %25 : vector<32x1xi1> to vector<32x1xi1>
    %27 = vector.broadcast %26 : vector<32x1xi1> to vector<32x128xi1>
    %28 = vector.broadcast %cst_11 : f32 to vector<32x128xf32>
    %29 = arith.select %27, %28, %17 : vector<32x128xi1>, vector<32x128xf32>
    %30 = tpu.concatenate %23, %12, %29 in 1 : vector<32x128xf32>, vector<32x128xf32>, vector<32x128xf32> -> vector<32x384xf32>
    %31 = arith.truncf %30 : vector<32x384xf32> to vector<32x384xbf16>
    %c0_12 = arith.constant 0 : index
    %c0_13 = arith.constant 0 : index
    %32 = vector.load %arg4[%c0_12, %c0_13] : memref<384x128xbf16, #tpu.memory_space<vmem>>, vector<384x128xbf16>
    %cst_14 = arith.constant dense<0.000000e+00> : vector<32x128xf32>
    %33 = tpu.matmul %31, %32, %cst_14 {dimension_numbers = #tpu.dot_dimension_numbers<[1], [0], [0], [1], [0, 0, 1, 1], [], []>} : vector<32x384xbf16>, vector<384x128xbf16>, vector<32x128xf32> -> vector<32x128xf32>
    %34 = vector.broadcast %1 : vector<1x128xf32> to vector<32x128xf32>
    %35 = arith.addf %33, %34 : vector<32x128xf32>
    %cst_15 = arith.constant 0.000000e+00 : f32
    %36 = vector.broadcast %cst_15 : f32 to vector<32x128xf32>
    %37 = arith.maximumf %35, %36 : vector<32x128xf32>
    %cst_16 = arith.constant 0.000000e+00 : f32
    %38 = vector.broadcast %cst_16 : f32 to vector<1x128xf32>
    %39 = vector.extract_strided_slice %37 {offsets = [0, 0], sizes = [31, 128], strides = [1, 1]} : vector<32x128xf32> to vector<31x128xf32>
    %40 = tpu.concatenate %38, %39 in 0 : vector<1x128xf32>, vector<31x128xf32> -> vector<32x128xf32>
    %41 = vector.extract_strided_slice %37 {offsets = [1, 0], sizes = [31, 128], strides = [1, 1]} : vector<32x128xf32> to vector<31x128xf32>
    %42 = tpu.concatenate %41, %38 in 0 : vector<31x128xf32>, vector<1x128xf32> -> vector<32x128xf32>
    %c0_i32_17 = arith.constant 0 : i32
    %43 = vector.broadcast %c0_i32_17 : i32 to vector<32x1xi32>
    %44 = arith.cmpi eq, %10, %43 : vector<32x1xi32>
    %cst_18 = arith.constant 0.000000e+00 : f32
    %45 = vector.shape_cast %44 : vector<32x1xi1> to vector<32x1xi1>
    %46 = vector.broadcast %45 : vector<32x1xi1> to vector<32x128xi1>
    %47 = vector.broadcast %cst_18 : f32 to vector<32x128xf32>
    %48 = arith.select %46, %47, %40 : vector<32x128xi1>, vector<32x128xf32>
    %c13_i32_19 = arith.constant 13 : i32
    %49 = vector.broadcast %c13_i32_19 : i32 to vector<32x1xi32>
    %50 = arith.cmpi eq, %10, %49 : vector<32x1xi32>
    %cst_20 = arith.constant 0.000000e+00 : f32
    %51 = vector.shape_cast %50 : vector<32x1xi1> to vector<32x1xi1>
    %52 = vector.broadcast %51 : vector<32x1xi1> to vector<32x128xi1>
    %53 = vector.broadcast %cst_20 : f32 to vector<32x128xf32>
    %54 = arith.select %52, %53, %42 : vector<32x128xi1>, vector<32x128xf32>
    %55 = tpu.concatenate %48, %37, %54 in 1 : vector<32x128xf32>, vector<32x128xf32>, vector<32x128xf32> -> vector<32x384xf32>
    %56 = arith.truncf %55 : vector<32x384xf32> to vector<32x384xbf16>
    %c0_21 = arith.constant 0 : index
    %c0_22 = arith.constant 0 : index
    %57 = vector.load %arg4[%c0_21, %c0_22] : memref<384x128xbf16, #tpu.memory_space<vmem>>, vector<384x128xbf16>
    %cst_23 = arith.constant dense<0.000000e+00> : vector<32x128xf32>
    %58 = tpu.matmul %56, %57, %cst_23 {dimension_numbers = #tpu.dot_dimension_numbers<[1], [0], [0], [1], [0, 0, 1, 1], [], []>} : vector<32x384xbf16>, vector<384x128xbf16>, vector<32x128xf32> -> vector<32x128xf32>
    %59 = vector.broadcast %1 : vector<1x128xf32> to vector<32x128xf32>
    %60 = arith.addf %58, %59 : vector<32x128xf32>
    %61 = arith.addf %7, %60 : vector<32x128xf32>
    %c0_24 = arith.constant 0 : index
    %c0_25 = arith.constant 0 : index
    %62 = vector.load %arg9[%c0_24, %c0_25] : memref<32x128xf32, #tpu.memory_space<vmem>>, vector<32x128xf32>
    tpu.vector_store %arg9[%c0_24, %c0_25], %61 {strides = array<i32>} : memref<32x128xf32, #tpu.memory_space<vmem>>, vector<32x128xf32>,
    %c0_26 = arith.constant 0 : index
    %c0_27 = arith.constant 0 : index
    %63 = tpu.strided_load %arg9[%c0_26, %c0_27] {strides = array<i32: 2, 1>} : memref<32x128xf32, #tpu.memory_space<vmem>>, vector<16x128xf32>
    %c1 = arith.constant 1 : index
    %c0_28 = arith.constant 0 : index
    %64 = tpu.strided_load %arg9[%c1, %c0_28] {strides = array<i32: 2, 1>} : memref<32x128xf32, #tpu.memory_space<vmem>>, vector<16x128xf32>
    %65 = tpu.iota {dimensions = array<i32: 0>} : vector<16x1xi32>
    %c7_i32 = arith.constant 7 : i32
    %66 = vector.broadcast %c7_i32 : i32 to vector<16x1xi32>
    %67 = arith.andi %65, %66 : vector<16x1xi32>
    %cst_29 = arith.constant 0xFF800000 : f32
    %68 = vector.broadcast %cst_29 : f32 to vector<1x128xf32>
    %69 = vector.extract_strided_slice %64 {offsets = [0, 0], sizes = [15, 128], strides = [1, 1]} : vector<16x128xf32> to vector<15x128xf32>
    %70 = tpu.concatenate %68, %69 in 0 : vector<1x128xf32>, vector<15x128xf32> -> vector<16x128xf32>
    %c0_i32_30 = arith.constant 0 : i32
    %71 = vector.broadcast %c0_i32_30 : i32 to vector<16x1xi32>
    %72 = arith.cmpi eq, %67, %71 : vector<16x1xi32>
    %cst_31 = arith.constant 0xFF800000 : f32
    %73 = vector.shape_cast %72 : vector<16x1xi1> to vector<16x1xi1>
    %74 = vector.broadcast %73 : vector<16x1xi1> to vector<16x128xi1>
    %75 = vector.broadcast %cst_31 : f32 to vector<16x128xf32>
    %76 = arith.select %74, %75, %70 : vector<16x128xi1>, vector<16x128xf32>
    %c2_i32 = arith.constant 2 : i32
    %77 = vector.broadcast %c2_i32 : i32 to vector<16x1xi32>
    %78 = arith.muli %77, %67 : vector<16x1xi32>
    %c1_i32 = arith.constant 1 : i32
    %79 = vector.broadcast %c1_i32 : i32 to vector<16x1xi32>
    %80 = arith.addi %78, %79 : vector<16x1xi32>
    %c14_i32 = arith.constant 14 : i32
    %81 = vector.broadcast %c14_i32 : i32 to vector<16x1xi32>
    %82 = arith.cmpi sge, %80, %81 : vector<16x1xi32>
    %cst_32 = arith.constant 0xFF800000 : f32
    %83 = vector.shape_cast %82 : vector<16x1xi1> to vector<16x1xi1>
    %84 = vector.broadcast %83 : vector<16x1xi1> to vector<16x128xi1>
    %85 = vector.broadcast %cst_32 : f32 to vector<16x128xf32>
    %86 = arith.select %84, %85, %64 : vector<16x128xi1>, vector<16x128xf32>
    %87 = arith.maximumf %63, %76 : vector<16x128xf32>
    %88 = arith.maximumf %87, %86 : vector<16x128xf32>
    %89 = tpu.iota {dimensions = array<i32: 0>} : vector<16x1xi32>
    %c7_i32_33 = arith.constant 7 : i32
    %90 = vector.broadcast %c7_i32_33 : i32 to vector<16x1xi32>
    %91 = arith.andi %89, %90 : vector<16x1xi32>
    %cst_34 = arith.constant 0.000000e+00 : f32
    %92 = vector.broadcast %cst_34 : f32 to vector<16x128xf32>
    %93 = arith.maximumf %88, %92 : vector<16x128xf32>
    %cst_35 = arith.constant 0.000000e+00 : f32
    %94 = vector.broadcast %cst_35 : f32 to vector<1x128xf32>
    %95 = vector.extract_strided_slice %93 {offsets = [0, 0], sizes = [15, 128], strides = [1, 1]} : vector<16x128xf32> to vector<15x128xf32>
    %96 = tpu.concatenate %94, %95 in 0 : vector<1x128xf32>, vector<15x128xf32> -> vector<16x128xf32>
    %97 = vector.extract_strided_slice %93 {offsets = [1, 0], sizes = [15, 128], strides = [1, 1]} : vector<16x128xf32> to vector<15x128xf32>
    %98 = tpu.concatenate %97, %94 in 0 : vector<15x128xf32>, vector<1x128xf32> -> vector<16x128xf32>
    %c0_i32_36 = arith.constant 0 : i32
    %99 = vector.broadcast %c0_i32_36 : i32 to vector<16x1xi32>
    %100 = arith.cmpi eq, %91, %99 : vector<16x1xi32>
    %cst_37 = arith.constant 0.000000e+00 : f32
    %101 = vector.shape_cast %100 : vector<16x1xi1> to vector<16x1xi1>
    %102 = vector.broadcast %101 : vector<16x1xi1> to vector<16x128xi1>
    %103 = vector.broadcast %cst_37 : f32 to vector<16x128xf32>
    %104 = arith.select %102, %103, %96 : vector<16x128xi1>, vector<16x128xf32>
    %c6_i32 = arith.constant 6 : i32
    %105 = vector.broadcast %c6_i32 : i32 to vector<16x1xi32>
    %106 = arith.cmpi eq, %91, %105 : vector<16x1xi32>
    %cst_38 = arith.constant 0.000000e+00 : f32
    %107 = vector.shape_cast %106 : vector<16x1xi1> to vector<16x1xi1>
    %108 = vector.broadcast %107 : vector<16x1xi1> to vector<16x128xi1>
    %109 = vector.broadcast %cst_38 : f32 to vector<16x128xf32>
    %110 = arith.select %108, %109, %98 : vector<16x128xi1>, vector<16x128xf32>
    %111 = tpu.concatenate %104, %93, %110 in 1 : vector<16x128xf32>, vector<16x128xf32>, vector<16x128xf32> -> vector<16x384xf32>
    %112 = arith.truncf %111 : vector<16x384xf32> to vector<16x384xbf16>
    %c0_39 = arith.constant 0 : index
    %c0_40 = arith.constant 0 : index
    %113 = vector.load %arg4[%c0_39, %c0_40] : memref<384x128xbf16, #tpu.memory_space<vmem>>, vector<384x128xbf16>
    %cst_41 = arith.constant dense<0.000000e+00> : vector<16x128xf32>
    %114 = tpu.matmul %112, %113, %cst_41 {dimension_numbers = #tpu.dot_dimension_numbers<[1], [0], [0], [1], [0, 0, 1, 1], [], []>} : vector<16x384xbf16>, vector<384x128xbf16>, vector<16x128xf32> -> vector<16x128xf32>
    %115 = vector.broadcast %1 : vector<1x128xf32> to vector<16x128xf32>
    %116 = arith.addf %114, %115 : vector<16x128xf32>
    %cst_42 = arith.constant 0.000000e+00 : f32
    %117 = vector.broadcast %cst_42 : f32 to vector<16x128xf32>
    %118 = arith.maximumf %116, %117 : vector<16x128xf32>
    %cst_43 = arith.constant 0.000000e+00 : f32
    %119 = vector.broadcast %cst_43 : f32 to vector<1x128xf32>
    %120 = vector.extract_strided_slice %118 {offsets = [0, 0], sizes = [15, 128], strides = [1, 1]} : vector<16x128xf32> to vector<15x128xf32>
    %121 = tpu.concatenate %119, %120 in 0 : vector<1x128xf32>, vector<15x128xf32> -> vector<16x128xf32>
    %122 = vector.extract_strided_slice %118 {offsets = [1, 0], sizes = [15, 128], strides = [1, 1]} : vector<16x128xf32> to vector<15x128xf32>
    %123 = tpu.concatenate %122, %119 in 0 : vector<15x128xf32>, vector<1x128xf32> -> vector<16x128xf32>
    %c0_i32_44 = arith.constant 0 : i32
    %124 = vector.broadcast %c0_i32_44 : i32 to vector<16x1xi32>
    %125 = arith.cmpi eq, %91, %124 : vector<16x1xi32>
    %cst_45 = arith.constant 0.000000e+00 : f32
    %126 = vector.shape_cast %125 : vector<16x1xi1> to vector<16x1xi1>
    %127 = vector.broadcast %126 : vector<16x1xi1> to vector<16x128xi1>
    %128 = vector.broadcast %cst_45 : f32 to vector<16x128xf32>
    %129 = arith.select %127, %128, %121 : vector<16x128xi1>, vector<16x128xf32>
    %c6_i32_46 = arith.constant 6 : i32
    %130 = vector.broadcast %c6_i32_46 : i32 to vector<16x1xi32>
    %131 = arith.cmpi eq, %91, %130 : vector<16x1xi32>
    %cst_47 = arith.constant 0.000000e+00 : f32
    %132 = vector.shape_cast %131 : vector<16x1xi1> to vector<16x1xi1>
    %133 = vector.broadcast %132 : vector<16x1xi1> to vector<16x128xi1>
    %134 = vector.broadcast %cst_47 : f32 to vector<16x128xf32>
    %135 = arith.select %133, %134, %123 : vector<16x128xi1>, vector<16x128xf32>
    %136 = tpu.concatenate %129, %118, %135 in 1 : vector<16x128xf32>, vector<16x128xf32>, vector<16x128xf32> -> vector<16x384xf32>
    %137 = arith.truncf %136 : vector<16x384xf32> to vector<16x384xbf16>
    %c0_48 = arith.constant 0 : index
    %c0_49 = arith.constant 0 : index
    %138 = vector.load %arg4[%c0_48, %c0_49] : memref<384x128xbf16, #tpu.memory_space<vmem>>, vector<384x128xbf16>
    %cst_50 = arith.constant dense<0.000000e+00> : vector<16x128xf32>
    %139 = tpu.matmul %137, %138, %cst_50 {dimension_numbers = #tpu.dot_dimension_numbers<[1], [0], [0], [1], [0, 0, 1, 1], [], []>} : vector<16x384xbf16>, vector<384x128xbf16>, vector<16x128xf32> -> vector<16x128xf32>
    %140 = vector.broadcast %1 : vector<1x128xf32> to vector<16x128xf32>
    %141 = arith.addf %139, %140 : vector<16x128xf32>
    %142 = arith.addf %88, %141 : vector<16x128xf32>
    %c0_51 = arith.constant 0 : index
    %c0_52 = arith.constant 0 : index
    %143 = vector.load %arg9[%c0_51, %c0_52] : memref<32x128xf32, #tpu.memory_space<vmem>>, vector<16x128xf32>
    tpu.vector_store %arg9[%c0_51, %c0_52], %142 {strides = array<i32>} : memref<32x128xf32, #tpu.memory_space<vmem>>, vector<16x128xf32>,
    %c0_53 = arith.constant 0 : index
    %c0_54 = arith.constant 0 : index
    %144 = tpu.strided_load %arg9[%c0_53, %c0_54] {strides = array<i32: 2, 1>} : memref<32x128xf32, #tpu.memory_space<vmem>>, vector<8x128xf32>
    %c1_55 = arith.constant 1 : index
    %c0_56 = arith.constant 0 : index
    %145 = tpu.strided_load %arg9[%c1_55, %c0_56] {strides = array<i32: 2, 1>} : memref<32x128xf32, #tpu.memory_space<vmem>>, vector<8x128xf32>
    %146 = tpu.iota {dimensions = array<i32: 0>} : vector<8x1xi32>
    %c3_i32 = arith.constant 3 : i32
    %147 = vector.broadcast %c3_i32 : i32 to vector<8x1xi32>
    %148 = arith.andi %146, %147 : vector<8x1xi32>
    %cst_57 = arith.constant 0xFF800000 : f32
    %149 = vector.broadcast %cst_57 : f32 to vector<1x128xf32>
    %150 = vector.extract_strided_slice %145 {offsets = [0, 0], sizes = [7, 128], strides = [1, 1]} : vector<8x128xf32> to vector<7x128xf32>
    %151 = tpu.concatenate %149, %150 in 0 : vector<1x128xf32>, vector<7x128xf32> -> vector<8x128xf32>
    %c0_i32_58 = arith.constant 0 : i32
    %152 = vector.broadcast %c0_i32_58 : i32 to vector<8x1xi32>
    %153 = arith.cmpi eq, %148, %152 : vector<8x1xi32>
    %cst_59 = arith.constant 0xFF800000 : f32
    %154 = vector.shape_cast %153 : vector<8x1xi1> to vector<8x1xi1>
    %155 = vector.broadcast %154 : vector<8x1xi1> to vector<8x128xi1>
    %156 = vector.broadcast %cst_59 : f32 to vector<8x128xf32>
    %157 = arith.select %155, %156, %151 : vector<8x128xi1>, vector<8x128xf32>
    %c2_i32_60 = arith.constant 2 : i32
    %158 = vector.broadcast %c2_i32_60 : i32 to vector<8x1xi32>
    %159 = arith.muli %158, %148 : vector<8x1xi32>
    %c1_i32_61 = arith.constant 1 : i32
    %160 = vector.broadcast %c1_i32_61 : i32 to vector<8x1xi32>
    %161 = arith.addi %159, %160 : vector<8x1xi32>
    %c7_i32_62 = arith.constant 7 : i32
    %162 = vector.broadcast %c7_i32_62 : i32 to vector<8x1xi32>
    %163 = arith.cmpi sge, %161, %162 : vector<8x1xi32>
    %cst_63 = arith.constant 0xFF800000 : f32
    %164 = vector.shape_cast %163 : vector<8x1xi1> to vector<8x1xi1>
    %165 = vector.broadcast %164 : vector<8x1xi1> to vector<8x128xi1>
    %166 = vector.broadcast %cst_63 : f32 to vector<8x128xf32>
    %167 = arith.select %165, %166, %145 : vector<8x128xi1>, vector<8x128xf32>
    %168 = arith.maximumf %144, %157 : vector<8x128xf32>
    %169 = arith.maximumf %168, %167 : vector<8x128xf32>
    %170 = tpu.iota {dimensions = array<i32: 0>} : vector<8x1xi32>
    %c3_i32_64 = arith.constant 3 : i32
    %171 = vector.broadcast %c3_i32_64 : i32 to vector<8x1xi32>
    %172 = arith.andi %170, %171 : vector<8x1xi32>
    %cst_65 = arith.constant 0.000000e+00 : f32
    %173 = vector.broadcast %cst_65 : f32 to vector<8x128xf32>
    %174 = arith.maximumf %169, %173 : vector<8x128xf32>
    %cst_66 = arith.constant 0.000000e+00 : f32
    %175 = vector.broadcast %cst_66 : f32 to vector<1x128xf32>
    %176 = vector.extract_strided_slice %174 {offsets = [0, 0], sizes = [7, 128], strides = [1, 1]} : vector<8x128xf32> to vector<7x128xf32>
    %177 = tpu.concatenate %175, %176 in 0 : vector<1x128xf32>, vector<7x128xf32> -> vector<8x128xf32>
    %178 = vector.extract_strided_slice %174 {offsets = [1, 0], sizes = [7, 128], strides = [1, 1]} : vector<8x128xf32> to vector<7x128xf32>
    %179 = tpu.concatenate %178, %175 in 0 : vector<7x128xf32>, vector<1x128xf32> -> vector<8x128xf32>
    %c0_i32_67 = arith.constant 0 : i32
    %180 = vector.broadcast %c0_i32_67 : i32 to vector<8x1xi32>
    %181 = arith.cmpi eq, %172, %180 : vector<8x1xi32>
    %cst_68 = arith.constant 0.000000e+00 : f32
    %182 = vector.shape_cast %181 : vector<8x1xi1> to vector<8x1xi1>
    %183 = vector.broadcast %182 : vector<8x1xi1> to vector<8x128xi1>
    %184 = vector.broadcast %cst_68 : f32 to vector<8x128xf32>
    %185 = arith.select %183, %184, %177 : vector<8x128xi1>, vector<8x128xf32>
    %c3_i32_69 = arith.constant 3 : i32
    %186 = vector.broadcast %c3_i32_69 : i32 to vector<8x1xi32>
    %187 = arith.cmpi eq, %172, %186 : vector<8x1xi32>
    %cst_70 = arith.constant 0.000000e+00 : f32
    %188 = vector.shape_cast %187 : vector<8x1xi1> to vector<8x1xi1>
    %189 = vector.broadcast %188 : vector<8x1xi1> to vector<8x128xi1>
    %190 = vector.broadcast %cst_70 : f32 to vector<8x128xf32>
    %191 = arith.select %189, %190, %179 : vector<8x128xi1>, vector<8x128xf32>
    %192 = tpu.concatenate %185, %174, %191 in 1 : vector<8x128xf32>, vector<8x128xf32>, vector<8x128xf32> -> vector<8x384xf32>
    %193 = arith.truncf %192 : vector<8x384xf32> to vector<8x384xbf16>
    %c0_71 = arith.constant 0 : index
    %c0_72 = arith.constant 0 : index
    %194 = vector.load %arg4[%c0_71, %c0_72] : memref<384x128xbf16, #tpu.memory_space<vmem>>, vector<384x128xbf16>
    %cst_73 = arith.constant dense<0.000000e+00> : vector<8x128xf32>
    %195 = tpu.matmul %193, %194, %cst_73 {dimension_numbers = #tpu.dot_dimension_numbers<[1], [0], [0], [1], [0, 0, 1, 1], [], []>} : vector<8x384xbf16>, vector<384x128xbf16>, vector<8x128xf32> -> vector<8x128xf32>
    %196 = vector.broadcast %1 : vector<1x128xf32> to vector<8x128xf32>
    %197 = arith.addf %195, %196 : vector<8x128xf32>
    %cst_74 = arith.constant 0.000000e+00 : f32
    %198 = vector.broadcast %cst_74 : f32 to vector<8x128xf32>
    %199 = arith.maximumf %197, %198 : vector<8x128xf32>
    %cst_75 = arith.constant 0.000000e+00 : f32
    %200 = vector.broadcast %cst_75 : f32 to vector<1x128xf32>
    %201 = vector.extract_strided_slice %199 {offsets = [0, 0], sizes = [7, 128], strides = [1, 1]} : vector<8x128xf32> to vector<7x128xf32>
    %202 = tpu.concatenate %200, %201 in 0 : vector<1x128xf32>, vector<7x128xf32> -> vector<8x128xf32>
    %203 = vector.extract_strided_slice %199 {offsets = [1, 0], sizes = [7, 128], strides = [1, 1]} : vector<8x128xf32> to vector<7x128xf32>
    %204 = tpu.concatenate %203, %200 in 0 : vector<7x128xf32>, vector<1x128xf32> -> vector<8x128xf32>
    %c0_i32_76 = arith.constant 0 : i32
    %205 = vector.broadcast %c0_i32_76 : i32 to vector<8x1xi32>
    %206 = arith.cmpi eq, %172, %205 : vector<8x1xi32>
    %cst_77 = arith.constant 0.000000e+00 : f32
    %207 = vector.shape_cast %206 : vector<8x1xi1> to vector<8x1xi1>
    %208 = vector.broadcast %207 : vector<8x1xi1> to vector<8x128xi1>
    %209 = vector.broadcast %cst_77 : f32 to vector<8x128xf32>
    %210 = arith.select %208, %209, %202 : vector<8x128xi1>, vector<8x128xf32>
    %c3_i32_78 = arith.constant 3 : i32
    %211 = vector.broadcast %c3_i32_78 : i32 to vector<8x1xi32>
    %212 = arith.cmpi eq, %172, %211 : vector<8x1xi32>
    %cst_79 = arith.constant 0.000000e+00 : f32
    %213 = vector.shape_cast %212 : vector<8x1xi1> to vector<8x1xi1>
    %214 = vector.broadcast %213 : vector<8x1xi1> to vector<8x128xi1>
    %215 = vector.broadcast %cst_79 : f32 to vector<8x128xf32>
    %216 = arith.select %214, %215, %204 : vector<8x128xi1>, vector<8x128xf32>
    %217 = tpu.concatenate %210, %199, %216 in 1 : vector<8x128xf32>, vector<8x128xf32>, vector<8x128xf32> -> vector<8x384xf32>
    %218 = arith.truncf %217 : vector<8x384xf32> to vector<8x384xbf16>
    %c0_80 = arith.constant 0 : index
    %c0_81 = arith.constant 0 : index
    %219 = vector.load %arg4[%c0_80, %c0_81] : memref<384x128xbf16, #tpu.memory_space<vmem>>, vector<384x128xbf16>
    %cst_82 = arith.constant dense<0.000000e+00> : vector<8x128xf32>
    %220 = tpu.matmul %218, %219, %cst_82 {dimension_numbers = #tpu.dot_dimension_numbers<[1], [0], [0], [1], [0, 0, 1, 1], [], []>} : vector<8x384xbf16>, vector<384x128xbf16>, vector<8x128xf32> -> vector<8x128xf32>
    %221 = vector.broadcast %1 : vector<1x128xf32> to vector<8x128xf32>
    %222 = arith.addf %220, %221 : vector<8x128xf32>
    %223 = arith.addf %169, %222 : vector<8x128xf32>
    %c0_83 = arith.constant 0 : index
    %c0_84 = arith.constant 0 : index
    %224 = vector.load %arg9[%c0_83, %c0_84] : memref<32x128xf32, #tpu.memory_space<vmem>>, vector<8x128xf32>
    tpu.vector_store %arg9[%c0_83, %c0_84], %223 {strides = array<i32>} : memref<32x128xf32, #tpu.memory_space<vmem>>, vector<8x128xf32>,
    %c0_85 = arith.constant 0 : index
    %c0_86 = arith.constant 0 : index
    %225 = tpu.strided_load %arg9[%c0_85, %c0_86] {strides = array<i32: 2, 1>} : memref<32x128xf32, #tpu.memory_space<vmem>>, vector<4x128xf32>
    %c1_87 = arith.constant 1 : index
    %c0_88 = arith.constant 0 : index
    %226 = tpu.strided_load %arg9[%c1_87, %c0_88] {strides = array<i32: 2, 1>} : memref<32x128xf32, #tpu.memory_space<vmem>>, vector<4x128xf32>
    %227 = tpu.iota {dimensions = array<i32: 0>} : vector<4x1xi32>
    %c1_i32_89 = arith.constant 1 : i32
    %228 = vector.broadcast %c1_i32_89 : i32 to vector<4x1xi32>
    %229 = arith.andi %227, %228 : vector<4x1xi32>
    %cst_90 = arith.constant 0xFF800000 : f32
    %230 = vector.broadcast %cst_90 : f32 to vector<1x128xf32>
    %231 = vector.extract_strided_slice %226 {offsets = [0, 0], sizes = [3, 128], strides = [1, 1]} : vector<4x128xf32> to vector<3x128xf32>
    %232 = tpu.concatenate %230, %231 in 0 : vector<1x128xf32>, vector<3x128xf32> -> vector<4x128xf32>
    %c0_i32_91 = arith.constant 0 : i32
    %233 = vector.broadcast %c0_i32_91 : i32 to vector<4x1xi32>
    %234 = arith.cmpi eq, %229, %233 : vector<4x1xi32>
    %cst_92 = arith.constant 0xFF800000 : f32
    %235 = vector.shape_cast %234 : vector<4x1xi1> to vector<4x1xi1>
    %236 = vector.broadcast %235 : vector<4x1xi1> to vector<4x128xi1>
    %237 = vector.broadcast %cst_92 : f32 to vector<4x128xf32>
    %238 = arith.select %236, %237, %232 : vector<4x128xi1>, vector<4x128xf32>
    %c2_i32_93 = arith.constant 2 : i32
    %239 = vector.broadcast %c2_i32_93 : i32 to vector<4x1xi32>
    %240 = arith.muli %239, %229 : vector<4x1xi32>
    %c1_i32_94 = arith.constant 1 : i32
    %241 = vector.broadcast %c1_i32_94 : i32 to vector<4x1xi32>
    %242 = arith.addi %240, %241 : vector<4x1xi32>
    %c4_i32 = arith.constant 4 : i32
    %243 = vector.broadcast %c4_i32 : i32 to vector<4x1xi32>
    %244 = arith.cmpi sge, %242, %243 : vector<4x1xi32>
    %cst_95 = arith.constant 0xFF800000 : f32
    %245 = vector.shape_cast %244 : vector<4x1xi1> to vector<4x1xi1>
    %246 = vector.broadcast %245 : vector<4x1xi1> to vector<4x128xi1>
    %247 = vector.broadcast %cst_95 : f32 to vector<4x128xf32>
    %248 = arith.select %246, %247, %226 : vector<4x128xi1>, vector<4x128xf32>
    %249 = arith.maximumf %225, %238 : vector<4x128xf32>
    %250 = arith.maximumf %249, %248 : vector<4x128xf32>
    %251 = tpu.iota {dimensions = array<i32: 0>} : vector<4x1xi32>
    %c1_i32_96 = arith.constant 1 : i32
    %252 = vector.broadcast %c1_i32_96 : i32 to vector<4x1xi32>
    %253 = arith.andi %251, %252 : vector<4x1xi32>
    %cst_97 = arith.constant 0.000000e+00 : f32
    %254 = vector.broadcast %cst_97 : f32 to vector<4x128xf32>
    %255 = arith.maximumf %250, %254 : vector<4x128xf32>
    %cst_98 = arith.constant 0.000000e+00 : f32
    %256 = vector.broadcast %cst_98 : f32 to vector<1x128xf32>
    %257 = vector.extract_strided_slice %255 {offsets = [0, 0], sizes = [3, 128], strides = [1, 1]} : vector<4x128xf32> to vector<3x128xf32>
    %258 = tpu.concatenate %256, %257 in 0 : vector<1x128xf32>, vector<3x128xf32> -> vector<4x128xf32>
    %259 = vector.extract_strided_slice %255 {offsets = [1, 0], sizes = [3, 128], strides = [1, 1]} : vector<4x128xf32> to vector<3x128xf32>
    %260 = tpu.concatenate %259, %256 in 0 : vector<3x128xf32>, vector<1x128xf32> -> vector<4x128xf32>
    %c0_i32_99 = arith.constant 0 : i32
    %261 = vector.broadcast %c0_i32_99 : i32 to vector<4x1xi32>
    %262 = arith.cmpi eq, %253, %261 : vector<4x1xi32>
    %cst_100 = arith.constant 0.000000e+00 : f32
    %263 = vector.shape_cast %262 : vector<4x1xi1> to vector<4x1xi1>
    %264 = vector.broadcast %263 : vector<4x1xi1> to vector<4x128xi1>
    %265 = vector.broadcast %cst_100 : f32 to vector<4x128xf32>
    %266 = arith.select %264, %265, %258 : vector<4x128xi1>, vector<4x128xf32>
    %c1_i32_101 = arith.constant 1 : i32
    %267 = vector.broadcast %c1_i32_101 : i32 to vector<4x1xi32>
    %268 = arith.cmpi eq, %253, %267 : vector<4x1xi32>
    %cst_102 = arith.constant 0.000000e+00 : f32
    %269 = vector.shape_cast %268 : vector<4x1xi1> to vector<4x1xi1>
    %270 = vector.broadcast %269 : vector<4x1xi1> to vector<4x128xi1>
    %271 = vector.broadcast %cst_102 : f32 to vector<4x128xf32>
    %272 = arith.select %270, %271, %260 : vector<4x128xi1>, vector<4x128xf32>
    %273 = tpu.concatenate %266, %255, %272 in 1 : vector<4x128xf32>, vector<4x128xf32>, vector<4x128xf32> -> vector<4x384xf32>
    %274 = arith.truncf %273 : vector<4x384xf32> to vector<4x384xbf16>
    %c0_103 = arith.constant 0 : index
    %c0_104 = arith.constant 0 : index
    %275 = vector.load %arg4[%c0_103, %c0_104] : memref<384x128xbf16, #tpu.memory_space<vmem>>, vector<384x128xbf16>
    %cst_105 = arith.constant dense<0.000000e+00> : vector<4x128xf32>
    %276 = tpu.matmul %274, %275, %cst_105 {dimension_numbers = #tpu.dot_dimension_numbers<[1], [0], [0], [1], [0, 0, 1, 1], [], []>} : vector<4x384xbf16>, vector<384x128xbf16>, vector<4x128xf32> -> vector<4x128xf32>
    %277 = vector.broadcast %1 : vector<1x128xf32> to vector<4x128xf32>
    %278 = arith.addf %276, %277 : vector<4x128xf32>
    %cst_106 = arith.constant 0.000000e+00 : f32
    %279 = vector.broadcast %cst_106 : f32 to vector<4x128xf32>
    %280 = arith.maximumf %278, %279 : vector<4x128xf32>
    %cst_107 = arith.constant 0.000000e+00 : f32
    %281 = vector.broadcast %cst_107 : f32 to vector<1x128xf32>
    %282 = vector.extract_strided_slice %280 {offsets = [0, 0], sizes = [3, 128], strides = [1, 1]} : vector<4x128xf32> to vector<3x128xf32>
    %283 = tpu.concatenate %281, %282 in 0 : vector<1x128xf32>, vector<3x128xf32> -> vector<4x128xf32>
    %284 = vector.extract_strided_slice %280 {offsets = [1, 0], sizes = [3, 128], strides = [1, 1]} : vector<4x128xf32> to vector<3x128xf32>
    %285 = tpu.concatenate %284, %281 in 0 : vector<3x128xf32>, vector<1x128xf32> -> vector<4x128xf32>
    %c0_i32_108 = arith.constant 0 : i32
    %286 = vector.broadcast %c0_i32_108 : i32 to vector<4x1xi32>
    %287 = arith.cmpi eq, %253, %286 : vector<4x1xi32>
    %cst_109 = arith.constant 0.000000e+00 : f32
    %288 = vector.shape_cast %287 : vector<4x1xi1> to vector<4x1xi1>
    %289 = vector.broadcast %288 : vector<4x1xi1> to vector<4x128xi1>
    %290 = vector.broadcast %cst_109 : f32 to vector<4x128xf32>
    %291 = arith.select %289, %290, %283 : vector<4x128xi1>, vector<4x128xf32>
    %c1_i32_110 = arith.constant 1 : i32
    %292 = vector.broadcast %c1_i32_110 : i32 to vector<4x1xi32>
    %293 = arith.cmpi eq, %253, %292 : vector<4x1xi32>
    %cst_111 = arith.constant 0.000000e+00 : f32
    %294 = vector.shape_cast %293 : vector<4x1xi1> to vector<4x1xi1>
    %295 = vector.broadcast %294 : vector<4x1xi1> to vector<4x128xi1>
    %296 = vector.broadcast %cst_111 : f32 to vector<4x128xf32>
    %297 = arith.select %295, %296, %285 : vector<4x128xi1>, vector<4x128xf32>
    %298 = tpu.concatenate %291, %280, %297 in 1 : vector<4x128xf32>, vector<4x128xf32>, vector<4x128xf32> -> vector<4x384xf32>
    %299 = arith.truncf %298 : vector<4x384xf32> to vector<4x384xbf16>
    %c0_112 = arith.constant 0 : index
    %c0_113 = arith.constant 0 : index
    %300 = vector.load %arg4[%c0_112, %c0_113] : memref<384x128xbf16, #tpu.memory_space<vmem>>, vector<384x128xbf16>
    %cst_114 = arith.constant dense<0.000000e+00> : vector<4x128xf32>
    %301 = tpu.matmul %299, %300, %cst_114 {dimension_numbers = #tpu.dot_dimension_numbers<[1], [0], [0], [1], [0, 0, 1, 1], [], []>} : vector<4x384xbf16>, vector<384x128xbf16>, vector<4x128xf32> -> vector<4x128xf32>
    %302 = vector.broadcast %1 : vector<1x128xf32> to vector<4x128xf32>
    %303 = arith.addf %301, %302 : vector<4x128xf32>
    %304 = arith.addf %250, %303 : vector<4x128xf32>
    %c0_115 = arith.constant 0 : index
    %c0_116 = arith.constant 0 : index
    %305 = vector.load %arg9[%c0_115, %c0_116] : memref<32x128xf32, #tpu.memory_space<vmem>>, vector<4x128xf32>
    tpu.vector_store %arg9[%c0_115, %c0_116], %304 {strides = array<i32>} : memref<32x128xf32, #tpu.memory_space<vmem>>, vector<4x128xf32>,
    %c0_117 = arith.constant 0 : index
    %c0_118 = arith.constant 0 : index
    %306 = tpu.strided_load %arg9[%c0_117, %c0_118] {strides = array<i32: 2, 1>} : memref<32x128xf32, #tpu.memory_space<vmem>>, vector<2x128xf32>
    %c1_119 = arith.constant 1 : index
    %c0_120 = arith.constant 0 : index
    %307 = tpu.strided_load %arg9[%c1_119, %c0_120] {strides = array<i32: 2, 1>} : memref<32x128xf32, #tpu.memory_space<vmem>>, vector<2x128xf32>
    %308 = arith.maximumf %306, %307 : vector<2x128xf32>
    %cst_121 = arith.constant 0.000000e+00 : f32
    %309 = vector.broadcast %cst_121 : f32 to vector<2x128xf32>
    %310 = arith.maximumf %308, %309 : vector<2x128xf32>
    %311 = arith.truncf %310 : vector<2x128xf32> to vector<2x128xbf16>
    %c128 = arith.constant 128 : index
    %c0_122 = arith.constant 0 : index
    %312 = vector.load %arg4[%c128, %c0_122] : memref<384x128xbf16, #tpu.memory_space<vmem>>, vector<128x128xbf16>
    %cst_123 = arith.constant dense<0.000000e+00> : vector<2x128xf32>
    %313 = tpu.matmul %311, %312, %cst_123 {dimension_numbers = #tpu.dot_dimension_numbers<[1], [0], [0], [1], [0, 0, 1, 1], [], []>} : vector<2x128xbf16>, vector<128x128xbf16>, vector<2x128xf32> -> vector<2x128xf32>
    %314 = vector.broadcast %1 : vector<1x128xf32> to vector<2x128xf32>
    %315 = arith.addf %313, %314 : vector<2x128xf32>
    %cst_124 = arith.constant 0.000000e+00 : f32
    %316 = vector.broadcast %cst_124 : f32 to vector<2x128xf32>
    %317 = arith.maximumf %315, %316 : vector<2x128xf32>
    %318 = arith.truncf %317 : vector<2x128xf32> to vector<2x128xbf16>
    %c128_125 = arith.constant 128 : index
    %c0_126 = arith.constant 0 : index
    %319 = vector.load %arg4[%c128_125, %c0_126] : memref<384x128xbf16, #tpu.memory_space<vmem>>, vector<128x128xbf16>
    %cst_127 = arith.constant dense<0.000000e+00> : vector<2x128xf32>
    %320 = tpu.matmul %318, %319, %cst_127 {dimension_numbers = #tpu.dot_dimension_numbers<[1], [0], [0], [1], [0, 0, 1, 1], [], []>} : vector<2x128xbf16>, vector<128x128xbf16>, vector<2x128xf32> -> vector<2x128xf32>
    %321 = vector.broadcast %1 : vector<1x128xf32> to vector<2x128xf32>
    %322 = arith.addf %320, %321 : vector<2x128xf32>
    %323 = arith.addf %308, %322 : vector<2x128xf32>
    %324 = arith.truncf %323 : vector<2x128xf32> to vector<2x128xbf16>
    %c0_128 = arith.constant 0 : index
    %c0_129 = arith.constant 0 : index
    %325 = vector.load %arg6[%c0_128, %c0_129] : memref<128x128xbf16, #tpu.memory_space<vmem>>, vector<128x128xbf16>
    %cst_130 = arith.constant dense<0.000000e+00> : vector<2x128xf32>
    %326 = tpu.matmul %324, %325, %cst_130 {dimension_numbers = #tpu.dot_dimension_numbers<[1], [0], [0], [1], [0, 0, 1, 1], [], []>} : vector<2x128xbf16>, vector<128x128xbf16>, vector<2x128xf32> -> vector<2x128xf32>
    %c0_131 = arith.constant 0 : index
    %c0_132 = arith.constant 0 : index
    %327 = vector.load %arg7[%c0_131, %c0_132] : memref<1x128xf32, #tpu.memory_space<vmem>>, vector<1x128xf32>
    %328 = vector.broadcast %327 : vector<1x128xf32> to vector<2x128xf32>
    %329 = arith.addf %326, %328 : vector<2x128xf32>
    %c0_133 = arith.constant 0 : index
    %c0_134 = arith.constant 0 : index
    %c0_135 = arith.constant 0 : index
    %330 = vector.load %arg8[%c0_133, %c0_134, %c0_135] : memref<1x2x128xf32, #tpu.memory_space<vmem>>, vector<1x2x128xf32>
    %331 = vector.shape_cast %330 : vector<1x2x128xf32> to vector<2x128xf32>
    %332 = vector.shape_cast %329 : vector<2x128xf32> to vector<1x2x128xf32>
    tpu.vector_store %arg8[%c0_133, %c0_134, %c0_135], %332 {strides = array<i32>} : memref<1x2x128xf32, #tpu.memory_space<vmem>>, vector<1x2x128xf32>,
    return
  }
  func.func @transform_0(%arg0: i32) -> (i32, i32, i32) {
    %c0_i32 = arith.constant 0 : i32
    %c0_i32_0 = arith.constant 0 : i32
    %c0_i32_1 = arith.constant 0 : i32
    return %arg0, %c0_i32, %c0_i32_0 : i32, i32, i32
  }
  func.func @transform_1(%arg0: i32) -> (i32, i32) {
    %c0_i32 = arith.constant 0 : i32
    %c0_i32_0 = arith.constant 0 : i32
    %c0_i32_1 = arith.constant 0 : i32
    return %c0_i32, %c0_i32_0 : i32, i32
  }
  func.func @transform_2(%arg0: i32) -> (i32, i32) {
    %c0_i32 = arith.constant 0 : i32
    %c0_i32_0 = arith.constant 0 : i32
    %c0_i32_1 = arith.constant 0 : i32
    return %c0_i32, %c0_i32_0 : i32, i32
  }
  func.func @transform_3(%arg0: i32) -> (i32, i32) {
    %c0_i32 = arith.constant 0 : i32
    %c0_i32_0 = arith.constant 0 : i32
    %c0_i32_1 = arith.constant 0 : i32
    return %c0_i32, %c0_i32_0 : i32, i32
  }
  func.func @transform_4(%arg0: i32) -> (i32, i32) {
    %c0_i32 = arith.constant 0 : i32
    %c0_i32_0 = arith.constant 0 : i32
    %c0_i32_1 = arith.constant 0 : i32
    return %c0_i32, %c0_i32_0 : i32, i32
  }
  func.func @transform_5(%arg0: i32) -> (i32, i32) {
    %c0_i32 = arith.constant 0 : i32
    %c0_i32_0 = arith.constant 0 : i32
    %c0_i32_1 = arith.constant 0 : i32
    return %c0_i32, %c0_i32_0 : i32, i32
  }
  func.func @transform_6(%arg0: i32) -> (i32, i32) {
    %c0_i32 = arith.constant 0 : i32
    %c0_i32_0 = arith.constant 0 : i32
    %c0_i32_1 = arith.constant 0 : i32
    return %c0_i32, %c0_i32_0 : i32, i32
  }
  func.func @transform_7(%arg0: i32) -> (i32, i32, i32) {
    %c0_i32 = arith.constant 0 : i32
    %c0_i32_0 = arith.constant 0 : i32
    %c0_i32_1 = arith.constant 0 : i32
    return %arg0, %c0_i32, %c0_i32_0 : i32, i32, i32
  }
}

</mosaic_0001>

<bundles_post_ra>
// kernel: tpu_custom_call.1
= control target key start
LH: loop header
LB: loop body
LE: loop exit
PB: predicated region body
PF: predicated region fallthrough
CT: control target
= control target key end

     0   :  { %s3734_s0 = inlined_call_operand.hbm [shape: bf16[2,32,128], index: 0, kind: input, shape index: {}]   ;;  %s3735_s1 = inlined_call_operand.hbm [shape: bf16[128,128], index: 1, kind: input, shape index: {}]   ;;  %s3736_s2 = inlined_call_operand.vmem [shape: f32[1,128], index: 2, kind: input, shape index: {}]   ;;  %s3737_s3 = inlined_call_operand.hbm [shape: bf16[384,128], index: 3, kind: input, shape index: {}]   ;;  %s3738_s4 = inlined_call_operand.vmem [shape: f32[1,128], index: 4, kind: input, shape index: {}]   ;;  %s3739_s5 = inlined_call_operand.hbm [shape: bf16[128,128], index: 5, kind: input, shape index: {}]   ;;  %s3740_s6 = inlined_call_operand.vmem [shape: f32[1,128], index: 6, kind: input, shape index: {}]   ;;  %s3741_s7 = inlined_call_operand.hbm [shape: f32[2,2,128], index: 7, kind: output, shape index: {}]  }
   0x1   :  { %3744 = sst [smem:[#allocation16_spill]] %s3735_s1 }
   0x2   :  { %12 = vsyncpa [#allocation4], 0 }
   0x3   :  { %14 = vsyncpa [#allocation4 + $0x1], 0 }
   0x4   :  { %15 = vsyncpa [#allocation7], 0 }
   0x5   :  { %16 = vsyncpa [#allocation10], 0 }
   0x6   :  { %17 = vsyncpa [#allocation5], 0 }
   0x7   :  { %19 = vsyncpa [#allocation5 + $0x1], 0  ;;  %s3263_s24 = smov 0   ;;  %s3265_s25 = smov 0  }
   0x8   :  { %s3267_s26 = smov 0   ;;  %s3269_s27 = smov 0  }
   0x9 LB: > { %s3284_s28 = sadd.s32 4294967295, %s3215_s27   ;;  %s2207_s29 = sadd.s32 4294967294, %s3215_s27   ;;  %s3215_s27 = sphi %s3269_s27, %s3780_s27   ;;  %s3211_s26 = sphi %s3267_s26, %s3779_s26   ;;  %s3207_s25 = sphi %s3265_s25, %s3778_s25   ;;  %s3203_s24 = sphi %s3263_s24, %s3777_s24  }
   0xa   : > { %p45_p0 = scmp.ne.s32.totalorder %s3207_s25, %s3203_s24  ;;  %p46_p1 = scmp.eq.s32.totalorder %s3284_s28, 0 }
   0xb   : > { %p195_p2 = scmp.eq.s32.totalorder %s3284_s28, 1  ;;  %p201_p3 = scmp.eq.s32.totalorder %s2207_s29, 1 }
   0xc   : > { %p3293_p4 = por %p46_p1, %p45_p0  ;;  %p2208_p5 = scmp.ge.s32.totalorder %s3215_s27, 1 }
   0xd   : > { %p3298_p6 = por %p201_p3, %p45_p0  ;;  %p208_p7 = scmp.lt.s32.totalorder %s3215_s27, 3 }
   0xe   : > { %s3747_s1 = sld [smem:[#allocation16_spill]]  ;;  %s3217_s13 = smov [#allocation6]  }
   0xf   : > { %p3306_p8 = pnand %p2208_p5, %p208_p7  ;;  %s221_s14 = sshll.u32 %s3217_s13, 4  ;;  %s222_s14 = int_to_ptr.vmem [resolvable:$true] %s221_s14 }
  0x10   : > { %s236_s18 = sshll.u32 %s3737_s3, 4  ;;  %s3742_s19 = smov 64   ;;  %s237_s18 = int_to_ptr.hbm [resolvable:$true] %s236_s18 }
  0x11   : > { %p2953_p9 = pneg %p3306_p8  ;;  %s3743_s20 = smov 4  }
  0x12   : > { %s3220_s21 = smov [#allocation8]   ;;  %s253_s9 = sshll.u32 %s3739_s5, 4  ;;  %s254_s9 = int_to_ptr.hbm [resolvable:$true] %s253_s9 }
  0x13   : > { %p3314_p10 = pnand %p2953_p9, %p46_p1  ;;  %s238_s22 = sshll.u32 %s3220_s21, 4  ;;  %s239_s22 = int_to_ptr.vmem [resolvable:$true] %s238_s22 }
  0x14   : > { %s219_s11 = sshll.u32 %s3747_s1, 4  ;;  %s3221_s10 = smov [#allocation9]   ;;  %s220_s11 = int_to_ptr.hbm [resolvable:$true] %s219_s11 }
  0x15   : > { %2956 = dma.hbm_to_vmem [thread:$0]  (!%p3314_p10), %s220_s11, 1024, %s222_s14, [#allocation7], %s3742_s19, %s3742_s19, %s3743_s20  }
  0x16   : > { %2959 = dma.hbm_to_vmem [thread:$0]  (!%p3314_p10), %s237_s18, 3072, %s239_s22, [#allocation7], %s3742_s19, %s3742_s19, %s3743_s20  }
  0x17   : > { %s255_s11 = sshll.u32 %s3221_s10, 4  ;;  %s3336_s13 = sadd.s32 1, %s3215_s27   ;;  %s256_s11 = int_to_ptr.vmem [resolvable:$true] %s255_s11 }
  0x18   : > { %2962 = dma.hbm_to_vmem [thread:$0]  (!%p3314_p10), %s254_s9, 1024, %s256_s11, [#allocation10], %s3742_s19, %s3742_s19, %s3743_s20  }
  0x19   : > { %s29_s14 = ssub.s32 %s3215_s27, %s3336_s13  ;;  %s32_s16 = sadd.s32 1, %s3211_s26 }
  0x1a   : > { %p30_p12 = scmp.eq.s32.totalorder %s29_s14, 0  ;;  %p39_p13 = scmp.ne.s32.totalorder %s3211_s26, %s3207_s25 }
  0x1b   : > { %p40_p0 = scmp.eq.s32.totalorder %s3215_s27, 0  ;;  %p2974_p5 = scmp.lt.s32.totalorder %s3215_s27, 2 }
  0x1c   : > { %s3350_s17 = scalar_select %p30_p12, %s3211_s26, %s32_s16  }
  0x1d   : > { %p3354_p3 = por %p195_p2, %p39_p13  ;;  %s272_s21 = sand.u32 1, %s3211_s26  }
  0x1e   : > { %s2806_s15 = sshll.u32 %s3215_s27, 4  ;;  %p41_p7 = por %p40_p0, %p39_p13 }
  0x1f   : > { %s2213_s22 = sshll.u32 %s272_s21, 4  ;;  %s281_s9 = scalar_lea.hbm %s3734_s0, %s2806_s15 }
  0x20   : > { %s282_s10 = sshll.u32 %s281_s9, 4  ;;  %s276_s11 = scalar_lea.vmem [#allocation3], %s2213_s22  ;;  %s283_s10 = int_to_ptr.hbm [resolvable:$true] %s282_s10 }
  0x21   : > { %s284_s14 = sshll.u32 %s276_s11, 4  ;;  %p3364_p9 = pnand %p2974_p5, %p41_p7  ;;  %s285_s14 = int_to_ptr.vmem [resolvable:$true] %s284_s14 }
  0x22   : > { %s273_s19 = scalar_lea.sflag [#allocation4], %s272_s21  ;;  %s3111_s20 = sshra.s32 %s283_s10, 4  ;;  %s3112_s20 = int_to_ptr.hbm [resolvable:$true] %s3111_s20 }
  0x23   : > { %s3113_s1 = scalar_lea.hbm %s3112_s20, 16  ;;  %p3115_p10 = pneg %p3364_p9 }
  0x24   : > { %p3114_p2 = scmp.ne.s32.totalorder %s3112_s20, %s3113_s1  ;;  %s3118_s22 = scalar_lea.hbm %s3734_s0, 32 }
  0x25   : > { %p3119_p0 = scmp.lt.s32.totalorder %s3112_s20, %s3734_s0  ;;  %p3120_p5 = scmp.lt.s32.totalorder %s3118_s22, %s3113_s1 }
  0x26   : > { %p3116_p12 = pnand %p3115_p10, %p3114_p2 }
  0x27   : > { %p3121_p7 = por %p3120_p5, %p3119_p0 }
  0x28   : > { %p3117_p13 = pneg %p3116_p12 }
  0x2a   : > { %p3122_p11 = pnand %p3121_p7, %p3117_p13 }
  0x2c   : > { %3125 = shalt.err (!%p3122_p11)
}
  0x2d   : > { %s3752_s21 = smov 4   ;;  %s3753_s11 = smov 64  }
  0x2e   : > { %2966 = dma.hbm_to_vmem [thread:$0]  (!%p3364_p9), %s283_s10, 256, %s285_s14, %s273_s19, %s3753_s11, %s3753_s11, %s3752_s21  }
  0x2f   : > { %296 = sbr.rel (%p3306_p8) target bundleno = 1913 (0x779), region = 48  ;;  %s3384_s15 = sand.u32 (!%p3306_p8), 1, %s3207_s25  }
  0x30   : > { %s2217_s20 = sshll.u32 (!%p3306_p8), %s3384_s15, 4  ;;  %s299_s1 = scalar_lea.sflag (!%p3306_p8), [#allocation4], %s3384_s15 }
  0x31   : > { %s3388_s23 = scalar_lea.vmem (!%p3306_p8), [#allocation3], %s2217_s20 }
  0x34   : > { %3186 = dma.done.wait (%p3293_p4), %s299_s1, 256  }
  0x35   : > { %3188 = vsyncadd (%p3293_p4), %s299_s1, 4294967040 }
  0x36   : > { %3190 = dma.done.wait (%p46_p1), [#allocation7], 4096  }
  0x37   : > { %3192 = vsyncadd (%p46_p1), [#allocation7], 4294963200 }
  0x38   : > { %3194 = dma.done.wait (%p46_p1), [#allocation10], 1024  }
  0x39   : > { %3196 = vsyncadd (%p46_p1), [#allocation10], 4294966272  ;;  %v2816_v0 = vld [vmem:[#allocation6 + $0x38] sm:$0xff]  ;;  %v2815_v1 = vld [vmem:[#allocation6 + $0x30] sm:$0xff]  ;;  %v453_v36 = vlaneseq  ;;  %vm470_vm0 = vcmask 1040384   ;;  %vm3222_vm2 = vmmov 1  }
  0x3a   : > { %434 = vmatpush.bf16.msra.mxu0 %v2816_v0  ;;  %v2814_v2 = vld [vmem:[#allocation6 + $0x28] sm:$0xff]  ;;  %v2813_v3 = vld [vmem:[#allocation6 + $0x20] sm:$0xff]  ;;  %v2812_v4 = vld [vmem:[#allocation6 + $0x18] sm:$0xff]  ;;  %vm483_vm4 = vcmask 1046528   ;;  %s2803_s22 = sshll.u32 %s3284_s28, 1  ;;  %s2221_s29 = sshll.u32 %s3384_s15, 1 }
  0x3b   : > { %v2832_v5 = vld [vmem:[#allocation8 + $0x78] sm:$0xff]  ;;  %v2811_v7 = vld [vmem:[#allocation6 + $0x10] sm:$0xff]  ;;  %v2810_v12 = vld [vmem:[#allocation6 + $0x8] sm:$0xff]  ;;  %v3409_v38 = vshrl.u32 %v453_v36, 7  ;;  %s2103_s11 = scalar_lea.hbm %s3741_s7, %s2803_s22  ;;  %s2093_s19 = scalar_lea.sflag [#allocation5], %s3384_s15 }
  0x3c   : > { %v2824_v6 = vld [vmem:[#allocation8 + $0x38] sm:$0xff]  ;;  %748 = vmatpush.bf16.msra.mxu2 %v2832_v5  ;;  %v2831_v8 = vld [vmem:[#allocation8 + $0x70] sm:$0xff]  ;;  %v2830_v13 = vld [vmem:[#allocation8 + $0x68] sm:$0xff]  ;;  %s2107_s12 = sshll.u32 %s2103_s11, 4  ;;  %s3161_s22 = scalar_lea.hbm %s3741_s7, 4  ;;  %s2108_s12 = int_to_ptr.hbm [resolvable:$true] %s2107_s12 }
  0x3d   : > { %729 = vmatpush.bf16.msra.mxu1 %v2824_v6  ;;  %v2823_v9 = vld [vmem:[#allocation8 + $0x30] sm:$0xff]  ;;  %v2840_v10 = vld [vmem:[#allocation8 + $0xb8] sm:$0xff]  ;;  %v2822_v14 = vld [vmem:[#allocation8 + $0x28] sm:$0xff]  ;;  %v458_v41 = vand.u32 15, %v3409_v38  ;;  %v3417_v45 = vadd.s32 8, %v3409_v38  ;;  %v456_v57 = vadd.s32 16, %v3409_v38 }
  0x3e   : > { %435 = vmatpush.bf16.msra.mxu0 %v2815_v1  ;;  %767 = vmatpush.bf16.msra.mxu3 %v2840_v10  ;;  %v2839_v11 = vld [vmem:[#allocation8 + $0xb0] sm:$0xff]  ;;  %v2809_v15 = vld [vmem:[#allocation6] sm:$0xff]  ;;  %v2808_v19 = vld [vmem:[%s3388_s23 + $0x8] sm:$0xff]  ;;  %s3155_s28 = sshra.s32 %s2108_s12, 4  ;;  %s3156_s28 = int_to_ptr.hbm [resolvable:$true] %s3155_s28 }
  0x3f   : > { %v2829_v16 = vld [vmem:[#allocation8 + $0x60] sm:$0xff]  ;;  %v2828_v20 = vld [vmem:[#allocation8 + $0x58] sm:$0xff]  ;;  %v2838_v22 = vld [vmem:[#allocation8 + $0xa8] sm:$0xff]  ;;  %vm2929_vm1 = vcmp.ne.s32.totalorder %v458_v41, 0  ;;  %v459_v53 = vand.u32 15, %v3417_v45  ;;  %v460_v1 = vand.u32 15, %v456_v57  ;;  %p3162_p11 = scmp.lt.s32.totalorder %s3156_s28, %s3741_s7 }
  0x40   : > { %749 = vmatpush.bf16.msra.mxu2 %v2831_v8  ;;  %v2821_v17 = vld [vmem:[#allocation8 + $0x20] sm:$0xff]  ;;  %v2820_v21 = vld [vmem:[#allocation8 + $0x18] sm:$0xff]  ;;  %v2827_v23 = vld [vmem:[#allocation8 + $0x50] sm:$0xff]  ;;  %s3157_s10 = scalar_lea.hbm %s3156_s28, 2 }
  0x41   : > { %730 = vmatpush.bf16.msra.mxu1 %v2823_v9  ;;  %v2807_v18 = vld [vmem:[%s3388_s23] sm:$0xff]  ;;  %v2826_v26 = vld [vmem:[#allocation8 + $0x48] sm:$0xff]  ;;  %v2836_v28 = vld [vmem:[#allocation8 + $0x98] sm:$0xff]  ;;  %vm2931_vm5 = vcmp.ne.s32.totalorder %v459_v53, 13  ;;  %vm2930_vm7 = vcmp.ne.s32.totalorder %v460_v1, 0  ;;  %s348_s23 = scalar_lea.vmem [#allocation11], %s2221_s29  ;;  %p3158_p1 = scmp.ne.s32.totalorder %s3156_s28, %s3157_s10 }
  0x42   : > { %436 = vmatpush.bf16.msra.mxu0 %v2814_v2  ;;  %768 = vmatpush.bf16.msra.mxu3 %v2839_v11  ;;  %v2819_v24 = vld [vmem:[#allocation8 + $0x10] sm:$0xff]  ;;  %v2837_v25 = vld [vmem:[#allocation8 + $0xa0] sm:$0xff]  ;;  %v2818_v27 = vld [vmem:[#allocation8 + $0x8] sm:$0xff]  ;;  %s2105_s30 = sshll.u32 %s348_s23, 4  ;;  %p3163_p9 = scmp.lt.s32.totalorder %s3161_s22, %s3157_s10  ;;  %s2106_s30 = int_to_ptr.vmem [resolvable:$true] %s2105_s30 }
  0x43   : > { %v2825_v29 = vld [vmem:[#allocation8 + $0x40] sm:$0xff]  ;;  %v2835_v31 = vld [vmem:[#allocation8 + $0x90] sm:$0xff]  ;;  %v2834_v32 = vld [vmem:[#allocation8 + $0x88] sm:$0xff]  ;;  %p3159_p4 = pnand %p3158_p1, %p3354_p3 }
  0x44   : > { %750 = vmatpush.bf16.msra.mxu2 %v2830_v13  ;;  %v2817_v30 = vld [vmem:[#allocation8] sm:$0xff]  ;;  %vm3422_vm3 = vmpackc.low %vm3222_vm2, %vm2929_vm1  ;;  %p3164_p2 = por %p3163_p9, %p3162_p11 }
  0x45   : > { %731 = vmatpush.bf16.msra.mxu1 %v2822_v14  ;;  %v2833_v33 = vld [vmem:[#allocation8 + $0x80] sm:$0xff]  ;;  %vm3436_vm6 = vmpackc.low %vm2931_vm5, %vm3222_vm2  ;;  %p3160_p8 = pneg %p3159_p4 }
  0x46   : > { %437 = vmatpush.bf16.msra.mxu0 %v2813_v3  ;;  %769 = vmatpush.bf16.msra.mxu3 %v2838_v22  ;;  %v3017_v34 = vld [vmem:[%s3736_s2] ss:$0 sm:$0xff]  ;;  %vm3449_vm8 = vmpackc.low %vm3222_vm2, %vm2930_vm7 }
  0x47   : > { %p3165_p10 = pnand %p3164_p2, %p3160_p8 }
  0x48   : > { %751 = vmatpush.bf16.msra.mxu2 %v2829_v16 }
  0x49   : > { %732 = vmatpush.bf16.msra.mxu1 %v2821_v17 }
  0x4a   : > { %438 = vmatpush.bf16.msra.mxu0 %v2812_v4  ;;  %770 = vmatpush.bf16.msra.mxu3 %v2837_v25 }
  0x4c   : > { %752 = vmatpush.bf16.msra.mxu2 %v2828_v20 }
  0x4d   : > { %733 = vmatpush.bf16.msra.mxu1 %v2820_v21 }
  0x4e   : > { %439 = vmatpush.bf16.msra.mxu0 %v2811_v7  ;;  %771 = vmatpush.bf16.msra.mxu3 %v2836_v28 }
  0x50   : > { %753 = vmatpush.bf16.msra.mxu2 %v2827_v23 }
  0x51   : > { %734 = vmatpush.bf16.msra.mxu1 %v2819_v24 }
  0x52   : > { %440 = vmatpush.bf16.msra.mxu0 %v2810_v12  ;;  %772 = vmatpush.bf16.msra.mxu3 %v2835_v31 }
  0x54   : > { %754 = vmatpush.bf16.msra.mxu2 %v2826_v26 }
  0x55   : > { %735 = vmatpush.bf16.msra.mxu1 %v2818_v27 }
  0x56   : > { %441 = vmatpush.bf16.msra.mxu0 %v2809_v15  ;;  %773 = vmatpush.bf16.msra.mxu3 %v2834_v32 }
  0x58   : > { %755 = vmatpush.bf16.msra.mxu2 %v2825_v29 }
  0x59   : > { %442 = vmatmul.bf16.vlgmr.msra.gmra.mxu0 %v2807_v18  ;;  %736 = vmatpush.bf16.msra.mxu1 %v2817_v30 }
  0x5a   : > { %832 = vmatpush.bf16.msrb.mxu0 %v2824_v6  ;;  %774 = vmatpush.bf16.msra.mxu3 %v2833_v33 }
  0x5c   : > { %870 = vmatpush.bf16.msrb.mxu2 %v2840_v10  ;;  %v2847_v10 = vld [vmem:[#allocation8 + $0x30] sm:$0xff] }
  0x5d   : > { %851 = vmatpush.bf16.msrb.mxu1 %v2832_v5  ;;  %v457_v5 = vadd.s32 24, %v3409_v38 }
  0x5e   : > { %833 = vmatpush.bf16.msrb.mxu0 %v2823_v9 }
  0x5f   : > { %v461_v12 = vand.u32 15, %v457_v5 }
  0x60   : > { %871 = vmatpush.bf16.msrb.mxu2 %v2839_v11 }
  0x61   : > { %852 = vmatpush.bf16.msrb.mxu1 %v2831_v8  ;;  %vm2932_vm9 = vcmp.ne.s32.totalorder %v461_v12, 13  ;;  %v3489_v12 = vld [vmem:[#allocation8 + $0x78] sm:$0xff] }
  0x62   : > { %834 = vmatpush.bf16.msrb.mxu0 %v2822_v14  ;;  %vm3458_vm10 = vmpackc.low %vm2932_vm9, %vm3222_vm2 }
  0x64   : > { %872 = vmatpush.bf16.msrb.mxu2 %v2838_v22 }
  0x65   : > { %853 = vmatpush.bf16.msrb.mxu1 %v2830_v13 }
  0x66   : > { %835 = vmatpush.bf16.msrb.mxu0 %v2821_v17 }
  0x68   : > { %873 = vmatpush.bf16.msrb.mxu2 %v2837_v25 }
  0x69   : > { %447 = vmatmul.bf16.gmra.mxu0 %v2808_v19  ;;  %854 = vmatpush.bf16.msrb.mxu1 %v2829_v16 }
  0x6a   : > { %836 = vmatpush.bf16.msrb.mxu0 %v2820_v21 }
  0x6c   : > { %874 = vmatpush.bf16.msrb.mxu2 %v2836_v28 }
  0x6d   : > { %855 = vmatpush.bf16.msrb.mxu1 %v2828_v20  ;;  %v3467_v20 = vld [vmem:[%s3738_s4] ss:$0 sm:$0xff] }
  0x6e   : > { %837 = vmatpush.bf16.msrb.mxu0 %v2819_v24 }
  0x70   : > { %875 = vmatpush.bf16.msrb.mxu2 %v2835_v31 }
  0x71   : > { %856 = vmatpush.bf16.msrb.mxu1 %v2827_v23 }
  0x72   : > { %838 = vmatpush.bf16.msrb.mxu0 %v2818_v27 }
  0x74   : > { %876 = vmatpush.bf16.msrb.mxu2 %v2834_v32 }
  0x75   : > { %857 = vmatpush.bf16.msrb.mxu1 %v2826_v26 }
  0x76   : > { %839 = vmatpush.bf16.msrb.mxu0 %v2817_v30 }
  0x78   : > { %877 = vmatpush.bf16.msrb.mxu2 %v2833_v33 }
  0x79   : > { %858 = vmatpush.bf16.msrb.mxu1 %v2825_v29 }
  0x7a   : > { %1173 = vmatpush.bf16.msra.mxu0 %v3489_v12 }
  0xd6   : > { %v443_v35 = vpop.f32.mrf.mxu0 }
  0xd7   : > { %v3407_v37 = vadd.f32 %v3017_v34, %v443_v35 }
  0xd9   : > { %v462_v39 = vmax.f32 %v3407_v37, 0.0 }
  0xdb   : > { %v471_v44 = vrot.slane %v462_v39, 7  ;;  %v484_v58 = vrot.slane %v462_v39, 1 }
  0xdd   : > { %v482_v49 = vsel %vm470_vm0, 0.0, %v471_v44 }
  0xde   : > { %v445_v40 = vpop.f32.mrf.mxu0 }
  0xdf   : > { %v3413_v42 = vadd.f32 %v3017_v34, %v445_v40 }
  0xe1   : > { %v463_v43 = vmax.f32 %v3413_v42, 0.0 }
  0xe3   : > { %v472_v46 = vrot.slane %v463_v43, 7  ;;  %v529_v47 = vpack.c.bf16 %v463_v43, %v462_v39  ;;  %v485_v55 = vrot.slane %v463_v43, 1 }
  0xe5   : > { %756 = vmatmul.bf16.vlgmr.msra.gmra.mxu2 %v529_v47  ;;  %v473_v48 = vsel %vm470_vm0, %v471_v44, %v472_v46  ;;  %v486_v60 = vsel %vm483_vm4, %v484_v58, %v485_v55 }
  0xe6   : > { %v448_v51 = vpop.f32.mrf.mxu0  ;;  %v2360_v52 = vpack.c.bf16 %v473_v48, %v482_v49 }
  0xe7   : > { %v3427_v54 = vadd.f32 %v3017_v34, %v448_v51 }
  0xe8   : > { %2361 = vmatmul.msk.bf16.vlgmr.msra.gmra.mxu1 %vm3422_vm3, %v2360_v52 }
  0xe9   : > { %v464_v56 = vmax.f32 %v3427_v54, 0.0 }
  0xeb   : > { %v487_v59 = vrot.slane %v464_v56, 1  ;;  %v474_v3 = vrot.slane %v464_v56, 7 }
  0xed   : > { %v488_v61 = vsel %vm483_vm4, %v485_v55, %v487_v59  ;;  %v475_v8 = vsel %vm470_vm0, %v472_v46, %v474_v3 }
  0xee   : > { %v450_v63 = vpop.f32.mrf.mxu0  ;;  %v2368_v0 = vpack.c.bf16 %v488_v61, %v486_v60 }
  0xef   : > { %v3440_v2 = vadd.f32 %v3017_v34, %v450_v63 }
  0xf0   : > { %2369 = vmatmul.msk.bf16.vlgmr.msra.gmra.mxu3 %vm3436_vm6, %v2368_v0 }
  0xf1   : > { %v465_v4 = vmax.f32 %v3440_v2, 0.0 }
  0xf3   : > { %v476_v6 = vrot.slane %v465_v4, 7  ;;  %v532_v7 = vpack.c.bf16 %v465_v4, %v464_v56  ;;  %v489_v13 = vrot.slane %v465_v4, 1 }
  0xf5   : > { %761 = vmatmul.bf16.gmra.mxu2 %v532_v7  ;;  %v477_v9 = vsel %vm470_vm0, %v474_v3, %v476_v6  ;;  %v490_v14 = vsel %vm483_vm4, %v487_v59, %v489_v13  ;;  %v495_v15 = vsel %vm483_vm4, %v489_v13, 0.0 }
  0xf6   : > { %v2364_v11 = vpack.c.bf16 %v477_v9, %v475_v8  ;;  %v2372_v17 = vpack.c.bf16 %v495_v15, %v490_v14  ;;  %v2848_v14 = vld [vmem:[#allocation8 + $0x38] sm:$0xff] }
  0xf7   : > { %v3492_v15 = vld [vmem:[#allocation8 + $0xb8] sm:$0xff]  ;;  %1159 = vmatpush.bf16.msrb.mxu3 %v2848_v14  ;;  %1224 = vmatpush.bf16.msra.mxu2 %v2848_v14 }
  0xf8   : > { %2365 = vmatmul.msk.bf16.gmra.mxu1 %vm3449_vm8, %v2364_v11 }
  0xf9   : > { %1187 = vmatpush.bf16.msra.mxu1 %v3492_v15 }
  0xfb   : > { %1160 = vmatpush.bf16.msrb.mxu3 %v2847_v10  ;;  %1225 = vmatpush.bf16.msra.mxu2 %v2847_v10 }
 0x100   : > { %2373 = vmatmul.msk.bf16.gmra.mxu3 %vm3458_vm10, %v2372_v17  ;;  %v3494_v17 = vld [vmem:[#allocation8 + $0x70] sm:$0xff] }
 0x101   : > { %1174 = vmatpush.bf16.msra.mxu0 %v3494_v17 }
 0x165   : > { %v738_v18 = vpop.f32.mrf.mxu1 }
 0x166   : > { %v739_v22 = vadd.f32 %v3467_v20, %v738_v18  ;;  %v3498_v18 = vld [vmem:[#allocation8 + $0xb0] sm:$0xff] }
 0x167   : > { %1188 = vmatpush.bf16.msra.mxu1 %v3498_v18 }
 0x168   : > { %v757_v19 = vpop.f32.mrf.mxu2 }
 0x169   : > { %v758_v25 = vadd.f32 %v757_v19, %v739_v22  ;;  %v3500_v19 = vld [vmem:[#allocation8 + $0x68] sm:$0xff] }
 0x16a   : > { %1175 = vmatpush.bf16.msra.mxu0 %v3500_v19  ;;  %v2846_v22 = vld [vmem:[#allocation8 + $0x28] sm:$0xff] }
 0x16b   : > { %1161 = vmatpush.bf16.msrb.mxu3 %v2846_v22  ;;  %1226 = vmatpush.bf16.msra.mxu2 %v2846_v22 }
 0x16d   : > { %v740_v21 = vpop.f32.mrf.mxu1 }
 0x16e   : > { %v741_v26 = vadd.f32 %v3467_v20, %v740_v21 }
 0x170   : > { %v759_v23 = vpop.f32.mrf.mxu2 }
 0x171   : > { %v760_v29 = vadd.f32 %v759_v23, %v741_v26  ;;  %v3505_v23 = vld [vmem:[#allocation8 + $0xa8] sm:$0xff]  ;;  %v2845_v26 = vld [vmem:[#allocation8 + $0x20] sm:$0xff] }
 0x172   : > { %1189 = vmatpush.bf16.msra.mxu1 %v3505_v23  ;;  %1162 = vmatpush.bf16.msrb.mxu3 %v2845_v26 }
 0x173   : > { %v776_v24 = vpop.f32.mrf.mxu3  ;;  %1227 = vmatpush.bf16.msra.mxu2 %v2845_v26 }
 0x174   : > { %v777_v27 = vadd.f32 %v776_v24, %v758_v25  ;;  %v3507_v25 = vld [vmem:[#allocation8 + $0x60] sm:$0xff] }
 0x175   : > { %v743_v28 = vpop.f32.mrf.mxu1  ;;  %1176 = vmatpush.bf16.msra.mxu0 %v3507_v25 }
 0x176   : > { %v786_v30 = vmax.f32 %v777_v27, 0.0  ;;  %v744_v35 = vadd.f32 %v3467_v20, %v743_v28  ;;  %v3510_v27 = vld [vmem:[#allocation8 + $0xa0] sm:$0xff]  ;;  %v3513_v28 = vld [vmem:[#allocation8 + $0x58] sm:$0xff] }
 0x177   : > { %1190 = vmatpush.bf16.msra.mxu1 %v3510_v27 }
 0x178   : > { %v762_v33 = vpop.f32.mrf.mxu2  ;;  %v794_v34 = vrot.slane %v786_v30, 7  ;;  %v806_v56 = vrot.slane %v786_v30, 1 }
 0x179   : > { %v763_v43 = vadd.f32 %v762_v33, %v744_v35  ;;  %v3516_v33 = vld [vmem:[#allocation8 + $0x98] sm:$0xff]  ;;  %1177 = vmatpush.bf16.msra.mxu0 %v3513_v28  ;;  %v3519_v35 = vld [vmem:[#allocation8 + $0x50] sm:$0xff] }
 0x17a   : > { %v805_v41 = vsel %vm470_vm0, 0.0, %v794_v34 }
 0x17b   : > { %v778_v31 = vpop.f32.mrf.mxu3  ;;  %1191 = vmatpush.bf16.msra.mxu1 %v3516_v33 }
 0x17c   : > { %v779_v32 = vadd.f32 %v778_v31, %v760_v29 }
 0x17d   : > { %v745_v46 = vpop.f32.mrf.mxu1  ;;  %1178 = vmatpush.bf16.msra.mxu0 %v3519_v35 }
 0x17e   : > { %v787_v36 = vmax.f32 %v779_v32, 0.0  ;;  %v746_v52 = vadd.f32 %v3467_v20, %v745_v46  ;;  %v2844_v32 = vld [vmem:[#allocation8 + $0x18] sm:$0xff] }
 0x17f   : > { %1163 = vmatpush.bf16.msrb.mxu3 %v2844_v32  ;;  %1228 = vmatpush.bf16.msra.mxu2 %v2844_v32 }
 0x180   : > { %v795_v39 = vrot.slane %v787_v36, 7  ;;  %v827_v40 = vpack.c.bf16 %v787_v36, %v786_v30  ;;  %v807_v51 = vrot.slane %v787_v36, 1  ;;  %v764_v55 = vpop.f32.mrf.mxu2 }
 0x181   : > { %v765_v58 = vadd.f32 %v764_v55, %v746_v52 }
 0x182   : > { %859 = vmatmul.bf16.vlgmr.msrb.gmra.mxu1 %v827_v40  ;;  %v796_v44 = vsel %vm470_vm0, %v794_v34, %v795_v39  ;;  %v808_v59 = vsel %vm483_vm4, %v806_v56, %v807_v51  ;;  %v2843_v40 = vld [vmem:[#allocation8 + $0x10] sm:$0xff]  ;;  %v2841_v56 = vld [vmem:[#allocation8] sm:$0xff] }
 0x183   : > { %v781_v47 = vpop.f32.mrf.mxu3  ;;  %v2376_v48 = vpack.c.bf16 %v796_v44, %v805_v41  ;;  %v3524_v41 = vld [vmem:[#allocation8 + $0x90] sm:$0xff]  ;;  %v3527_v44 = vld [vmem:[#allocation8 + $0x48] sm:$0xff]  ;;  %1164 = vmatpush.bf16.msrb.mxu3 %v2843_v40  ;;  %1229 = vmatpush.bf16.msra.mxu2 %v2843_v40 }
 0x184   : > { %v782_v49 = vadd.f32 %v781_v47, %v763_v43  ;;  %1192 = vmatpush.bf16.msra.mxu1 %v3524_v41  ;;  %1179 = vmatpush.bf16.msra.mxu0 %v3527_v44 }
 0x185   : > { %2377 = vmatmul.msk.bf16.vlgmr.msrb.gmra.mxu0 %vm3422_vm3, %v2376_v48 }
 0x186   : > { %v788_v53 = vmax.f32 %v782_v49, 0.0  ;;  %v3530_v49 = vld [vmem:[#allocation8 + $0x88] sm:$0xff] }
 0x188   : > { %v809_v57 = vrot.slane %v788_v53, 1  ;;  %v797_v50 = vrot.slane %v788_v53, 7  ;;  %1193 = vmatpush.bf16.msra.mxu1 %v3530_v49 }
 0x18a   : > { %v810_v60 = vsel %vm483_vm4, %v807_v51, %v809_v57  ;;  %v798_v5 = vsel %vm470_vm0, %v795_v39, %v797_v50  ;;  %v3533_v51 = vld [vmem:[#allocation8 + $0x40] sm:$0xff] }
 0x18b   : > { %v783_v61 = vpop.f32.mrf.mxu3  ;;  %v2384_v63 = vpack.c.bf16 %v810_v60, %v808_v59  ;;  %1180 = vmatpush.bf16.msra.mxu0 %v3533_v51 }
 0x18c   : > { %v784_v0 = vadd.f32 %v783_v61, %v765_v58  ;;  %v2857_v58 = vld [vmem:[#allocation8 + $0x80] sm:$0xff] }
 0x18d   : > { %2385 = vmatmul.msk.bf16.vlgmr.msrb.gmra.mxu2 %vm3436_vm6, %v2384_v63  ;;  %1194 = vmatpush.bf16.msra.mxu1 %v2857_v58 }
 0x18e   : > { %v789_v1 = vmax.f32 %v784_v0, 0.0 }
 0x18f   : > { %1252 = vmatpush.bf16.msrb.mxu0 %v3492_v15 }
 0x190   : > { %v799_v3 = vrot.slane %v789_v1, 7  ;;  %v830_v4 = vpack.c.bf16 %v789_v1, %v788_v53  ;;  %v811_v8 = vrot.slane %v789_v1, 1 }
 0x192   : > { %864 = vmatmul.bf16.gmra.mxu1 %v830_v4  ;;  %v800_v6 = vsel %vm470_vm0, %v797_v50, %v799_v3  ;;  %v812_v9 = vsel %vm483_vm4, %v809_v57, %v811_v8  ;;  %v817_v11 = vsel %vm483_vm4, %v811_v8, 0.0  ;;  %v904_v50 = vand.u32 7, %v3409_v38 }
 0x193   : > { %v2380_v7 = vpack.c.bf16 %v800_v6, %v798_v5  ;;  %v2388_v62 = vpack.c.bf16 %v817_v11, %v812_v9  ;;  %1253 = vmatpush.bf16.msrb.mxu0 %v3498_v18 }
 0x194   : > { %vm914_vm11 = vcmp.eq.s32.totalorder %v904_v50, 0  ;;  %vm2934_vm3 = vcmp.ne.s32.totalorder %v904_v50, 6 }
 0x195   : > { %2381 = vmatmul.msk.bf16.gmra.mxu0 %vm3449_vm8, %v2380_v7  ;;  %v922_v7 = vmul.u32 2, %v904_v50  ;;  %vm3572_vm1 = vmneg %vm914_vm11 }
 0x197   : > { %1254 = vmatpush.bf16.msrb.mxu0 %v3505_v23  ;;  %v924_v11 = vadd.s32 1, %v922_v7  ;;  %v2872_v7 = vld [vmem:[#allocation8 + $0x38] sm:$0xff] }
 0x198   : > { %1497 = vmatpush.bf16.msrb.mxu1 %v2872_v7 }
 0x199   : > { %vm926_vm12 = vcmp.ge.s32.totalorder %v924_v11, 14  ;;  %v2887_v11 = vld [vmem:[#allocation8 + $0xb0] sm:$0xff] }
 0x19b   : > { %1255 = vmatpush.bf16.msrb.mxu0 %v3510_v27 }
 0x19d   : > { %2389 = vmatmul.msk.bf16.gmra.mxu2 %vm3458_vm10, %v2388_v62 }
 0x19f   : > { %1256 = vmatpush.bf16.msrb.mxu0 %v3516_v33 }
 0x1a3   : > { %1257 = vmatpush.bf16.msrb.mxu0 %v3524_v41 }
 0x1a7   : > { %1258 = vmatpush.bf16.msrb.mxu0 %v3530_v49 }
 0x1ab   : > { %1259 = vmatpush.bf16.msrb.mxu0 %v2857_v58 }
 0x1ff   : > { %v860_v16 = vpop.f32.mrf.mxu1 }
 0x202   : > { %v841_v13 = vpop.f32.mrf.mxu0 }
 0x203   : > { %v842_v21 = vadd.f32 %v3467_v20, %v841_v13 }
 0x205   : > { %v861_v29 = vadd.f32 %v860_v16, %v842_v21 }
 0x207   : > { %v862_v34 = vpop.f32.mrf.mxu1 }
 0x20a   : > { %v843_v24 = vpop.f32.mrf.mxu0 }
 0x20b   : > { %v844_v36 = vadd.f32 %v3467_v20, %v843_v24 }
 0x20d   : > { %v863_v46 = vadd.f32 %v862_v34, %v844_v36 }
 0x20f   : > { %v865_v55 = vpop.f32.mrf.mxu1 }
 0x210   : > { %v879_v30 = vpop.f32.mrf.mxu2 }
 0x211   : > { %v880_v31 = vadd.f32 %v879_v30, %v861_v29 }
 0x212   : > { %v846_v43 = vpop.f32.mrf.mxu0 }
 0x213   : > { %v889_v39 = vadd.f32 %v880_v31, %v3407_v37  ;;  %v2842_v37 = vld [vmem:[#allocation8 + $0x8] sm:$0xff]  ;;  %v847_v52 = vadd.f32 %v3467_v20, %v846_v43 }
 0x214   : > { %1165 = vmatpush.bf16.msrb.mxu3 %v2842_v37  ;;  %1230 = vmatpush.bf16.msra.mxu2 %v2842_v37 }
 0x215   : > { %893 = vst [vmem:[#allocation2] sm:$0xff] %v889_v39  ;;  %v866_v57 = vadd.f32 %v865_v55, %v847_v52 }
 0x217   : > { %v867_v1 = vpop.f32.mrf.mxu1 }
 0x218   : > { %v881_v47 = vpop.f32.mrf.mxu2  ;;  %1166 = vmatpush.bf16.msrb.mxu3 %v2841_v56  ;;  %1231 = vmatpush.bf16.msra.mxu2 %v2841_v56 }
 0x219   : > { %v882_v48 = vadd.f32 %v881_v47, %v863_v46 }
 0x21a   : > { %v848_v59 = vpop.f32.mrf.mxu0 }
 0x21b   : > { %v890_v53 = vadd.f32 %v882_v48, %v3413_v42  ;;  %v849_v42 = vadd.f32 %v3467_v20, %v848_v59 }
 0x21c   : > { %1238 = vmatpush.bf16.msra.mxu3 %v3489_v12 }
 0x21d   : > { %894 = vst [vmem:[#allocation2 + $0x8] sm:$0xff] %v890_v53  ;;  %v868_v3 = vadd.f32 %v867_v1, %v849_v42 }
 0x220   : > { %v884_v60 = vpop.f32.mrf.mxu2  ;;  %1239 = vmatpush.bf16.msra.mxu3 %v3494_v17 }
 0x221   : > { %v885_v61 = vadd.f32 %v884_v60, %v866_v57 }
 0x223   : > { %v891_v63 = vadd.f32 %v885_v61, %v3427_v54  ;;  %v905_v54 = vand.u32 7, %v3417_v45 }
 0x224   : > { %v901_v0 = vld [vmem:[#allocation2 + $0x1] ss:$2 sm:$0xff]  ;;  %1240 = vmatpush.bf16.msra.mxu3 %v3500_v19  ;;  %v897_v13 = vld [vmem:[#allocation2] ss:$2 sm:$0xff] }
 0x225   : > { %895 = vst [vmem:[#allocation2 + $0x10] sm:$0xff] %v891_v63  ;;  %v908_v4 = vrot.slane %v901_v0, 7  ;;  %v923_v12 = vmul.u32 2, %v905_v54  ;;  %v932_v15 = vsel %vm926_vm12, -inf, %v901_v0  ;;  %vm915_vm13 = vcmp.eq.s32.totalorder %v905_v54, 0 }
 0x226   : > { %vm3566_vm15 = vmneg %vm915_vm13  ;;  %vm2933_vm2 = vcmp.ne.s32.totalorder %v905_v54, 6  ;;  %v2888_v54 = vld [vmem:[#allocation8 + $0xb8] sm:$0xff] }
 0x227   : > { %v913_v9 = vsel %vm470_vm0, -inf, %v908_v4  ;;  %v925_v45 = vadd.s32 1, %v923_v12  ;;  %vm2488_vm5 = vmpackc.low %vm3566_vm15, %vm3572_vm1  ;;  %v2870_v12 = vld [vmem:[#allocation8 + $0x28] sm:$0xff]  ;;  %vm1616_vm15 = vcmask 1042432  }
 0x228   : > { %v886_v5 = vpop.f32.mrf.mxu2  ;;  %v920_v62 = vsel %vm914_vm11, -inf, %v913_v9  ;;  %1241 = vmatpush.bf16.msra.mxu3 %v3507_v25  ;;  %vm3585_vm6 = vmpackc.low %vm2933_vm2, %vm2934_vm3  ;;  %v2871_v9 = vld [vmem:[#allocation8 + $0x30] sm:$0xff]  ;;  %v2882_v25 = vld [vmem:[#allocation8 + $0x88] sm:$0xff] }
 0x229   : > { %v887_v6 = vadd.f32 %v886_v5, %v868_v3  ;;  %v934_v14 = vmax.f32 %v897_v13, %v920_v62  ;;  %vm927_vm14 = vcmp.ge.s32.totalorder %v925_v45, 14  ;;  %v3612_v62 = vld [vmem:[#allocation8 + $0x68] sm:$0xff]  ;;  %1498 = vmatpush.bf16.msrb.mxu1 %v2871_v9  ;;  %v2869_v45 = vld [vmem:[#allocation8 + $0x20] sm:$0xff] }
 0x22a   : > { %v2886_v13 = vld [vmem:[#allocation8 + $0xa8] sm:$0xff] }
 0x22b   : > { %v892_v8 = vadd.f32 %v887_v6, %v3440_v2  ;;  %v3557_v10 = vmax.f32 %v934_v14, %v932_v15  ;;  %v2880_v6 = vld [vmem:[#allocation8 + $0x78] sm:$0xff]  ;;  %v2877_v14 = vld [vmem:[#allocation8 + $0x60] sm:$0xff] }
 0x22c   : > { %1242 = vmatpush.bf16.msra.mxu3 %v3513_v28  ;;  %1510 = vmatpush.bf16.msrb.mxu2 %v2880_v6  ;;  %v2876_v15 = vld [vmem:[#allocation8 + $0x58] sm:$0xff] }
 0x22d   : > { %896 = vst [vmem:[#allocation2 + $0x18] sm:$0xff] %v892_v8  ;;  %v938_v22 = vmax.f32 %v3557_v10, 0.0  ;;  %v3609_v8 = vld [vmem:[#allocation8 + $0x70] sm:$0xff]  ;;  %1499 = vmatpush.bf16.msrb.mxu1 %v2870_v12 }
 0x22f   : > { %v942_v27 = vrot.slane %v938_v22, 7  ;;  %v948_v29 = vrot.slane %v938_v22, 1 }
 0x230   : > { %1243 = vmatpush.bf16.msra.mxu3 %v3519_v35  ;;  %1511 = vmatpush.bf16.msrb.mxu2 %v3609_v8 }
 0x231   : > { %v947_v34 = vsel %vm470_vm0, 0.0, %v942_v27  ;;  %1500 = vmatpush.bf16.msrb.mxu1 %v2869_v45 }
 0x234   : > { %v903_v2 = vld [vmem:[#allocation2 + $0x11] ss:$2 sm:$0xff]  ;;  %v899_v16 = vld [vmem:[#allocation2 + $0x10] ss:$2 sm:$0xff]  ;;  %1244 = vmatpush.bf16.msra.mxu3 %v3527_v44  ;;  %1512 = vmatpush.bf16.msrb.mxu2 %v3612_v62 }
 0x235   : > { %v909_v17 = vrot.slane %v903_v2, 7  ;;  %v933_v23 = vsel %vm927_vm14, -inf, %v903_v2  ;;  %v2885_v2 = vld [vmem:[#allocation8 + $0xa0] sm:$0xff] }
 0x237   : > { %v910_v18 = vsel %vm470_vm0, %v908_v4, %v909_v17  ;;  %v2868_v17 = vld [vmem:[#allocation8 + $0x18] sm:$0xff] }
 0x238   : > { %v921_v19 = vsel %vm915_vm13, -inf, %v910_v18  ;;  %1245 = vmatpush.bf16.msra.mxu3 %v3533_v51  ;;  %1513 = vmatpush.bf16.msrb.mxu2 %v2877_v14  ;;  %v2884_v18 = vld [vmem:[#allocation8 + $0x98] sm:$0xff] }
 0x239   : > { %v935_v21 = vmax.f32 %v899_v16, %v921_v19  ;;  %v2875_v16 = vld [vmem:[#allocation8 + $0x50] sm:$0xff]  ;;  %1501 = vmatpush.bf16.msrb.mxu1 %v2868_v17 }
 0x23a   : > { %v2867_v19 = vld [vmem:[#allocation8 + $0x10] sm:$0xff] }
 0x23b   : > { %v3564_v24 = vmax.f32 %v935_v21, %v933_v23  ;;  %v2883_v21 = vld [vmem:[#allocation8 + $0x90] sm:$0xff]  ;;  %v2866_v23 = vld [vmem:[#allocation8 + $0x8] sm:$0xff] }
 0x23c   : > { %1514 = vmatpush.bf16.msrb.mxu2 %v2876_v15 }
 0x23d   : > { %v939_v26 = vmax.f32 %v3564_v24, 0.0  ;;  %1502 = vmatpush.bf16.msrb.mxu1 %v2867_v19 }
 0x23f   : > { %v965_v30 = vpack.c.bf16 %v939_v26, %v938_v22  ;;  %v943_v31 = vrot.slane %v939_v26, 7  ;;  %v949_v32 = vrot.slane %v939_v26, 1  ;;  %v2874_v22 = vld [vmem:[#allocation8 + $0x48] sm:$0xff]  ;;  %v2873_v26 = vld [vmem:[#allocation8 + $0x40] sm:$0xff] }
 0x240   : > { %1515 = vmatpush.bf16.msrb.mxu2 %v2875_v16 }
 0x241   : > { %1181 = vmatmul.bf16.vlgmr.msra.gmra.mxu0 %v965_v30  ;;  %v944_v33 = vsel %vm470_vm0, %v942_v27, %v943_v31  ;;  %v950_v35 = vsel %vm483_vm4, %v948_v29, %v949_v32  ;;  %v953_v36 = vsel %vm483_vm4, %v949_v32, 0.0  ;;  %1503 = vmatpush.bf16.msrb.mxu1 %v2866_v23  ;;  %v2865_v30 = vld [vmem:[#allocation8] sm:$0xff] }
 0x242   : > { %v2489_v40 = vpack.c.bf16 %v944_v33, %v947_v34  ;;  %v2494_v41 = vpack.c.bf16 %v953_v36, %v950_v35  ;;  %1549 = vmatpush.bf16.msra.mxu0 %v2872_v7  ;;  %v2881_v33 = vld [vmem:[#allocation8 + $0x80] sm:$0xff] }
 0x244   : > { %2490 = vmatmul.msk.bf16.vlgmr.msrb.gmra.mxu3 %vm2488_vm5, %v2489_v40  ;;  %2495 = vmatmul.msk.bf16.vlgmr.msra.gmra.mxu1 %vm3585_vm6, %v2494_v41 }
 0x245   : > { %1523 = vmatpush.bf16.msrb.mxu3 %v2888_v54  ;;  %1516 = vmatpush.bf16.msrb.mxu2 %v2874_v22 }
 0x246   : > { %1550 = vmatpush.bf16.msra.mxu0 %v2871_v9  ;;  %1504 = vmatpush.bf16.msrb.mxu1 %v2865_v30 }
 0x249   : > { %1524 = vmatpush.bf16.msrb.mxu3 %v2887_v11  ;;  %1517 = vmatpush.bf16.msrb.mxu2 %v2873_v26 }
 0x24a   : > { %1551 = vmatpush.bf16.msra.mxu0 %v2870_v12  ;;  %1562 = vmatpush.bf16.msra.mxu1 %v2880_v6 }
 0x24d   : > { %1525 = vmatpush.bf16.msrb.mxu3 %v2886_v13 }
 0x24e   : > { %1552 = vmatpush.bf16.msra.mxu0 %v2869_v45  ;;  %1563 = vmatpush.bf16.msra.mxu1 %v3609_v8 }
 0x251   : > { %1526 = vmatpush.bf16.msrb.mxu3 %v2885_v2 }
 0x252   : > { %1553 = vmatpush.bf16.msra.mxu0 %v2868_v17  ;;  %1564 = vmatpush.bf16.msra.mxu1 %v3612_v62 }
 0x255   : > { %1527 = vmatpush.bf16.msrb.mxu3 %v2884_v18 }
 0x256   : > { %1554 = vmatpush.bf16.msra.mxu0 %v2867_v19  ;;  %1565 = vmatpush.bf16.msra.mxu1 %v2877_v14  ;;  %v2912_v19 = vld [vmem:[#allocation8 + $0xb8] sm:$0xff] }
 0x259   : > { %1528 = vmatpush.bf16.msrb.mxu3 %v2883_v21 }
 0x25a   : > { %1555 = vmatpush.bf16.msra.mxu0 %v2866_v23  ;;  %1566 = vmatpush.bf16.msra.mxu1 %v2876_v15  ;;  %v2911_v23 = vld [vmem:[#allocation8 + $0xb0] sm:$0xff] }
 0x25d   : > { %1529 = vmatpush.bf16.msrb.mxu3 %v2882_v25 }
 0x25e   : > { %1556 = vmatpush.bf16.msra.mxu0 %v2865_v30  ;;  %1567 = vmatpush.bf16.msra.mxu1 %v2875_v16  ;;  %v2896_v16 = vld [vmem:[#allocation8 + $0x38] sm:$0xff]  ;;  %v2909_v30 = vld [vmem:[#allocation8 + $0xa0] sm:$0xff] }
 0x261   : > { %1530 = vmatpush.bf16.msrb.mxu3 %v2881_v33 }
 0x262   : > { %1568 = vmatpush.bf16.msra.mxu1 %v2874_v22  ;;  %v2895_v22 = vld [vmem:[#allocation8 + $0x30] sm:$0xff] }
 0x266   : > { %1569 = vmatpush.bf16.msra.mxu1 %v2873_v26  ;;  %v2894_v26 = vld [vmem:[#allocation8 + $0x28] sm:$0xff] }
 0x2be   : > { %v1182_v43 = vpop.f32.mrf.mxu0 }
 0x2c1   : > { %v1196_v47 = vpop.f32.mrf.mxu1 }
 0x2c6   : > { %v1184_v52 = vpop.f32.mrf.mxu0 }
 0x2c7   : > { %v1168_v44 = vpop.f32.mrf.mxu3 }
 0x2c8   : > { %v1169_v46 = vadd.f32 %v3467_v20, %v1168_v44 }
 0x2c9   : > { %v1198_v56 = vpop.f32.mrf.mxu1 }
 0x2ca   : > { %v1183_v48 = vadd.f32 %v1182_v43, %v1169_v46 }
 0x2cc   : > { %v1197_v37 = vadd.f32 %v1196_v47, %v1183_v48  ;;  %v1272_v47 = vand.u32 3, %v3409_v38 }
 0x2ce   : > { %v1201_v53 = vmax.f32 %v1197_v37, 0.0  ;;  %vm1277_vm7 = vcmp.eq.s32.totalorder %v1272_v47, 0  ;;  %vm2935_vm10 = vcmp.ne.s32.totalorder %v1272_v47, 3 }
 0x2cf   : > { %v1170_v49 = vpop.f32.mrf.mxu3  ;;  %vm3626_vm9 = vmneg %vm1277_vm7 }
 0x2d0   : > { %v1171_v51 = vadd.f32 %v3467_v20, %v1170_v49  ;;  %v1205_v58 = vrot.slane %v1201_v53, 7  ;;  %v1211_v60 = vrot.slane %v1201_v53, 1  ;;  %vm2604_vm11 = vmpackc.low %vm3626_vm9, %vm3626_vm9 }
 0x2d1   : > { %vm3635_vm12 = vmpackc.low %vm2935_vm10, %vm2935_vm10 }
 0x2d2   : > { %v1185_v55 = vadd.f32 %v1184_v52, %v1171_v51  ;;  %v1210_v0 = vsel %vm470_vm0, 0.0, %v1205_v58 }
 0x2d4   : > { %v1199_v57 = vadd.f32 %v1198_v56, %v1185_v55 }
 0x2d6   : > { %v1202_v59 = vmax.f32 %v1199_v57, 0.0 }
 0x2d8   : > { %v1206_v61 = vrot.slane %v1202_v59, 7  ;;  %v1212_v42 = vrot.slane %v1202_v59, 1  ;;  %v1222_v63 = vpack.c.bf16 %v1202_v59, %v1201_v53 }
 0x2da   : > { %v1216_v50 = vsel %vm483_vm4, %v1212_v42, 0.0  ;;  %1246 = vmatmul.bf16.vlgmr.msra.gmra.mxu3 %v1222_v63  ;;  %v1207_v1 = vsel %vm470_vm0, %v1205_v58, %v1206_v61  ;;  %v1213_v3 = vsel %vm483_vm4, %v1211_v60, %v1212_v42 }
 0x2db   : > { %v2499_v4 = vpack.c.bf16 %v1207_v1, %v1210_v0  ;;  %v2504_v5 = vpack.c.bf16 %v1216_v50, %v1213_v3  ;;  %1818 = vmatpush.bf16.msra.mxu3 %v2896_v16 }
 0x2dd   : > { %2500 = vmatmul.msk.bf16.vlgmr.msra.gmra.mxu2 %vm2488_vm5, %v2499_v4  ;;  %2505 = vmatmul.msk.bf16.vlgmr.msrb.gmra.mxu0 %vm3585_vm6, %v2504_v5 }
 0x2de   : > { %1575 = vmatpush.bf16.msra.mxu2 %v2888_v54 }
 0x2df   : > { %1819 = vmatpush.bf16.msra.mxu3 %v2895_v22 }
 0x2e2   : > { %1576 = vmatpush.bf16.msra.mxu2 %v2887_v11 }
 0x2e3   : > { %1820 = vmatpush.bf16.msra.mxu3 %v2894_v26 }
 0x2e6   : > { %1577 = vmatpush.bf16.msra.mxu2 %v2886_v13 }
 0x2ea   : > { %1578 = vmatpush.bf16.msra.mxu2 %v2885_v2 }
 0x2ee   : > { %1579 = vmatpush.bf16.msra.mxu2 %v2884_v18  ;;  %v2904_v18 = vld [vmem:[#allocation8 + $0x78] sm:$0xff] }
 0x2ef   : > { %1831 = vmatpush.bf16.msrb.mxu0 %v2904_v18 }
 0x2f2   : > { %1580 = vmatpush.bf16.msra.mxu2 %v2883_v21  ;;  %v2903_v21 = vld [vmem:[#allocation8 + $0x70] sm:$0xff] }
 0x2f3   : > { %1832 = vmatpush.bf16.msrb.mxu0 %v2903_v21 }
 0x2f6   : > { %1581 = vmatpush.bf16.msra.mxu2 %v2882_v25  ;;  %v2902_v25 = vld [vmem:[#allocation8 + $0x68] sm:$0xff] }
 0x2f7   : > { %1833 = vmatpush.bf16.msrb.mxu0 %v2902_v25 }
 0x2fa   : > { %1582 = vmatpush.bf16.msra.mxu2 %v2881_v33  ;;  %v2908_v33 = vld [vmem:[#allocation8 + $0x98] sm:$0xff] }
 0x35a   : > { %v1261_v31 = vpop.f32.mrf.mxu0 }
 0x35d   : > { %v1247_v27 = vpop.f32.mrf.mxu3 }
 0x360   : > { %v1233_v28 = vpop.f32.mrf.mxu2 }
 0x361   : > { %v1234_v29 = vadd.f32 %v3467_v20, %v1233_v28  ;;  %v2901_v28 = vld [vmem:[#allocation8 + $0x60] sm:$0xff] }
 0x362   : > { %v1263_v43 = vpop.f32.mrf.mxu0  ;;  %1834 = vmatpush.bf16.msrb.mxu0 %v2901_v28 }
 0x363   : > { %v1248_v32 = vadd.f32 %v1247_v27, %v1234_v29  ;;  %v2910_v27 = vld [vmem:[#allocation8 + $0xa8] sm:$0xff]  ;;  %v2893_v29 = vld [vmem:[#allocation8 + $0x20] sm:$0xff] }
 0x364   : > { %1821 = vmatpush.bf16.msra.mxu3 %v2893_v29 }
 0x365   : > { %v1262_v34 = vadd.f32 %v1261_v31, %v1248_v32  ;;  %v1249_v40 = vpop.f32.mrf.mxu3  ;;  %v2900_v31 = vld [vmem:[#allocation8 + $0x58] sm:$0xff] }
 0x366   : > { %v2892_v32 = vld [vmem:[#allocation8 + $0x18] sm:$0xff]  ;;  %1835 = vmatpush.bf16.msrb.mxu0 %v2900_v31 }
 0x367   : > { %v1266_v35 = vadd.f32 %v1262_v34, %v3557_v10  ;;  %v1281_v10 = vmul.u32 2, %v1272_v47  ;;  %v2899_v34 = vld [vmem:[#allocation8 + $0x50] sm:$0xff]  ;;  %v2905_v47 = vld [vmem:[#allocation8 + $0x80] sm:$0xff] }
 0x368   : > { %v1235_v36 = vpop.f32.mrf.mxu2  ;;  %1822 = vmatpush.bf16.msra.mxu3 %v2892_v32 }
 0x369   : > { %1268 = vst [vmem:[#allocation2] sm:$0xff] %v1266_v35  ;;  %v1236_v39 = vadd.f32 %v3467_v20, %v1235_v36  ;;  %v1282_v48 = vadd.s32 1, %v1281_v10  ;;  %v2891_v35 = vld [vmem:[#allocation8 + $0x10] sm:$0xff] }
 0x36a   : > { %v2907_v36 = vld [vmem:[#allocation8 + $0x90] sm:$0xff]  ;;  %1836 = vmatpush.bf16.msrb.mxu0 %v2899_v34 }
 0x36b   : > { %v1250_v41 = vadd.f32 %v1249_v40, %v1236_v39  ;;  %vm1283_vm8 = vcmp.ge.s32.totalorder %v1282_v48, 7  ;;  %v2898_v39 = vld [vmem:[#allocation8 + $0x48] sm:$0xff] }
 0x36c   : > { %1823 = vmatpush.bf16.msra.mxu3 %v2891_v35  ;;  %v2890_v40 = vld [vmem:[#allocation8 + $0x8] sm:$0xff] }
 0x36d   : > { %v1264_v44 = vadd.f32 %v1263_v43, %v1250_v41  ;;  %v2906_v41 = vld [vmem:[#allocation8 + $0x88] sm:$0xff]  ;;  %v2897_v43 = vld [vmem:[#allocation8 + $0x40] sm:$0xff] }
 0x36e   : > { %1837 = vmatpush.bf16.msrb.mxu0 %v2898_v39 }
 0x36f   : > { %v1267_v46 = vadd.f32 %v1264_v44, %v3564_v24  ;;  %v2889_v44 = vld [vmem:[#allocation8] sm:$0xff] }
 0x370   : > { %1824 = vmatpush.bf16.msra.mxu3 %v2890_v40 }
 0x371   : > { %1269 = vst [vmem:[#allocation2 + $0x8] sm:$0xff] %v1267_v46 }
 0x372   : > { %1838 = vmatpush.bf16.msrb.mxu0 %v2897_v43 }
 0x374   : > { %1825 = vmatpush.bf16.msra.mxu3 %v2889_v44 }
 0x378   : > { %v1271_v37 = vld [vmem:[#allocation2 + $0x1] ss:$2 sm:$0xff]  ;;  %v1270_v52 = vld [vmem:[#allocation2] ss:$2 sm:$0xff] }
 0x379   : > { %v1274_v49 = vrot.slane %v1271_v37, 7  ;;  %v1286_v55 = vsel %vm1283_vm8, -inf, %v1271_v37 }
 0x37b   : > { %v1276_v51 = vsel %vm470_vm0, -inf, %v1274_v49 }
 0x37c   : > { %v1280_v24 = vsel %vm1277_vm7, -inf, %v1276_v51 }
 0x37d   : > { %v1287_v53 = vmax.f32 %v1270_v52, %v1280_v24 }
 0x37f   : > { %v3623_v56 = vmax.f32 %v1287_v53, %v1286_v55  ;;  %v1592_v55 = vand.u32 1, %v3409_v38 }
 0x381   : > { %v1289_v57 = vmax.f32 %v3623_v56, 0.0  ;;  %vm2936_vm1 = vcmp.ne.s32.totalorder %v1592_v55, 1 }
 0x382   : > { %vm3672_vm3 = vmpackc.low %vm2936_vm1, %vm2936_vm1 }
 0x383   : > { %v1303_v59 = vpack.c.bf16 %v1289_v57, %v1289_v57  ;;  %v1291_v60 = vrot.slane %v1289_v57, 7  ;;  %v1294_v61 = vrot.slane %v1289_v57, 1  ;;  %v1601_v57 = vmul.u32 2, %v1592_v55 }
 0x385   : > { %1518 = vmatmul.bf16.vlgmr.msrb.gmra.mxu2 %v1303_v59  ;;  %v1293_v42 = vsel %vm470_vm0, 0.0, %v1291_v60  ;;  %v1296_v63 = vsel %vm483_vm4, %v1294_v61, 0.0  ;;  %v1602_v59 = vadd.s32 1, %v1601_v57  ;;  %v2926_v57 = vld [vmem:[#allocation9 + $0x28] sm:$0xff] }
 0x386   : > { %v2605_v50 = vpack.c.bf16 %v1293_v42, %v1293_v42  ;;  %v2610_v1 = vpack.c.bf16 %v1296_v63, %v1296_v63  ;;  %1870 = vmatpush.bf16.msrb.mxu2 %v2896_v16 }
 0x387   : > { %vm1603_vm13 = vcmp.ge.s32.totalorder %v1602_v59, 4  ;;  %v2924_v59 = vld [vmem:[#allocation9 + $0x18] sm:$0xff] }
 0x388   : > { %2606 = vmatmul.msk.bf16.vlgmr.msrb.gmra.mxu1 %vm2604_vm11, %v2605_v50  ;;  %2611 = vmatmul.msk.bf16.vlgmr.msrb.gmra.mxu3 %vm3635_vm12, %v2610_v1 }
 0x389   : > { %1844 = vmatpush.bf16.msrb.mxu1 %v2912_v19  ;;  %1883 = vmatpush.bf16.msrb.mxu3 %v2904_v18 }
 0x38a   : > { %1871 = vmatpush.bf16.msrb.mxu2 %v2895_v22 }
 0x38d   : > { %1845 = vmatpush.bf16.msrb.mxu1 %v2911_v23  ;;  %1884 = vmatpush.bf16.msrb.mxu3 %v2903_v21 }
 0x38e   : > { %1872 = vmatpush.bf16.msrb.mxu2 %v2894_v26 }
 0x391   : > { %1846 = vmatpush.bf16.msrb.mxu1 %v2910_v27  ;;  %1885 = vmatpush.bf16.msrb.mxu3 %v2902_v25 }
 0x392   : > { %1873 = vmatpush.bf16.msrb.mxu2 %v2893_v29  ;;  %v2918_v29 = vld [vmem:[#allocation8 + $0x68] sm:$0xff] }
 0x395   : > { %1847 = vmatpush.bf16.msrb.mxu1 %v2909_v30  ;;  %1886 = vmatpush.bf16.msrb.mxu3 %v2901_v28 }
 0x396   : > { %1874 = vmatpush.bf16.msrb.mxu2 %v2892_v32  ;;  %v2915_v32 = vld [vmem:[#allocation8 + $0x50] sm:$0xff] }
 0x399   : > { %1848 = vmatpush.bf16.msrb.mxu1 %v2908_v33  ;;  %1887 = vmatpush.bf16.msrb.mxu3 %v2900_v31  ;;  %v2916_v31 = vld [vmem:[#allocation8 + $0x58] sm:$0xff] }
 0x39a   : > { %1875 = vmatpush.bf16.msrb.mxu2 %v2891_v35 }
 0x39d   : > { %1849 = vmatpush.bf16.msrb.mxu1 %v2907_v36  ;;  %1888 = vmatpush.bf16.msrb.mxu3 %v2899_v34  ;;  %v2913_v34 = vld [vmem:[#allocation8 + $0x40] sm:$0xff] }
 0x39e   : > { %1876 = vmatpush.bf16.msrb.mxu2 %v2890_v40  ;;  %v3020_v40 = vld [vmem:[%s3738_s4] ss:$0 sm:$0xff] }
 0x3a1   : > { %1850 = vmatpush.bf16.msrb.mxu1 %v2906_v41  ;;  %1889 = vmatpush.bf16.msrb.mxu3 %v2898_v39 }
 0x3a2   : > { %1877 = vmatpush.bf16.msrb.mxu2 %v2889_v44 }
 0x3a5   : > { %1851 = vmatpush.bf16.msrb.mxu1 %v2905_v47  ;;  %1890 = vmatpush.bf16.msrb.mxu3 %v2897_v43 }
 0x405   : > { %v1506_v3 = vpop.f32.mrf.mxu1 }
 0x406   : > { %v1507_v4 = vadd.f32 %v3467_v20, %v1506_v3 }
 0x408   : > { %v1519_v5 = vpop.f32.mrf.mxu2 }
 0x409   : > { %v1520_v6 = vadd.f32 %v1519_v5, %v1507_v4 }
 0x40b   : > { %v1532_v7 = vpop.f32.mrf.mxu3 }
 0x40c   : > { %v1533_v54 = vadd.f32 %v1532_v7, %v1520_v6 }
 0x40d   : > { %v1508_v8 = vpop.f32.mrf.mxu1 }
 0x40e   : > { %v1536_v9 = vmax.f32 %v1533_v54, 0.0 }
 0x410   : > { %v1538_v11 = vrot.slane %v1536_v9, 7  ;;  %v1541_v62 = vrot.slane %v1536_v9, 1  ;;  %v1547_v12 = vpack.c.bf16 %v1536_v9, %v1536_v9  ;;  %v1521_v13 = vpop.f32.mrf.mxu2 }
 0x412   : > { %v1540_v14 = vsel %vm470_vm0, 0.0, %v1538_v11  ;;  %v1543_v45 = vsel %vm483_vm4, %v1541_v62, 0.0  ;;  %1570 = vmatmul.bf16.vlgmr.msra.gmra.mxu1 %v1547_v12  ;;  %vm1597_vm4 = vcmp.eq.s32.totalorder %v1592_v55, 0  ;;  %v2920_v62 = vld [vmem:[#allocation8 + $0x78] sm:$0xff]  ;;  %v2927_v55 = vld [vmem:[#allocation9 + $0x30] sm:$0xff] }
 0x413   : > { %v2615_v2 = vpack.c.bf16 %v1540_v14, %v1540_v14  ;;  %v2620_v15 = vpack.c.bf16 %v1543_v45, %v1543_v45  ;;  %v1534_v17 = vpop.f32.mrf.mxu3  ;;  %vm3663_vm14 = vmneg %vm1597_vm4  ;;  %1980 = vmatpush.bf16.msra.mxu1 %v2920_v62 }
 0x414   : > { %vm2720_vm2 = vmpackc.low %vm3663_vm14, %vm3663_vm14 }
 0x415   : > { %2616 = vmatmul.msk.bf16.vlgmr.msra.gmra.mxu0 %vm2604_vm11, %v2615_v2  ;;  %2621 = vmatmul.msk.bf16.vlgmr.msra.gmra.mxu2 %vm3635_vm12, %v2620_v15 }
 0x416   : > { %1896 = vmatpush.bf16.msra.mxu0 %v2912_v19  ;;  %1995 = vmatpush.bf16.msra.mxu2 %v2920_v62 }
 0x41a   : > { %1897 = vmatpush.bf16.msra.mxu0 %v2911_v23 }
 0x41e   : > { %1898 = vmatpush.bf16.msra.mxu0 %v2910_v27 }
 0x422   : > { %1899 = vmatpush.bf16.msra.mxu0 %v2909_v30  ;;  %v2917_v30 = vld [vmem:[#allocation8 + $0x60] sm:$0xff] }
 0x426   : > { %1900 = vmatpush.bf16.msra.mxu0 %v2908_v33  ;;  %v2914_v33 = vld [vmem:[#allocation8 + $0x48] sm:$0xff] }
 0x42a   : > { %1901 = vmatpush.bf16.msra.mxu0 %v2907_v36 }
 0x42e   : > { %1902 = vmatpush.bf16.msra.mxu0 %v2906_v41 }
 0x432   : > { %1903 = vmatpush.bf16.msra.mxu0 %v2905_v47 }
 0x48f   : > { %v1571_v46 = vpop.f32.mrf.mxu1 }
 0x492   : > { %v1558_v10 = vpop.f32.mrf.mxu0 }
 0x493   : > { %v1559_v48 = vadd.f32 %v3467_v20, %v1558_v10 }
 0x495   : > { %v1572_v49 = vadd.f32 %v1571_v46, %v1559_v48 }
 0x497   : > { %v1573_v37 = vpop.f32.mrf.mxu1 }
 0x498   : > { %v1584_v51 = vpop.f32.mrf.mxu2 }
 0x499   : > { %v1585_v52 = vadd.f32 %v1584_v51, %v1572_v49 }
 0x49a   : > { %v1560_v24 = vpop.f32.mrf.mxu0 }
 0x49b   : > { %v1588_v53 = vadd.f32 %v1585_v52, %v3623_v56 }
 0x49d   : > { %1589 = vst [vmem:[#allocation2] sm:$0xff] %v1588_v53  ;;  %v2928_v53 = vld [vmem:[#allocation9 + $0x38] sm:$0xff] }
 0x4a0   : > { %v1586_v58 = vpop.f32.mrf.mxu2 }
 0x4a1   : > { %v2925_v58 = vld [vmem:[#allocation9 + $0x20] sm:$0xff] }
 0x4a4   : > { %v1591_v60 = vld [vmem:[#allocation2 + $0x1] ss:$2 sm:$0xf]  ;;  %v1590_v56 = vld [vmem:[#allocation2] ss:$2 sm:$0xf] }
 0x4a5   : > { %v1594_v61 = vrot.slane %v1591_v60, 7  ;;  %v1606_v0 = vsel %vm1603_vm13, -inf, %v1591_v60  ;;  %v2923_v60 = vld [vmem:[#allocation9 + $0x10] sm:$0xff] }
 0x4a7   : > { %v1596_v42 = vsel %vm470_vm0, -inf, %v1594_v61 }
 0x4a8   : > { %v1600_v63 = vsel %vm1597_vm4, -inf, %v1596_v42 }
 0x4a9   : > { %v1607_v38 = vmax.f32 %v1590_v56, %v1600_v63 }
 0x4ab   : > { %v3660_v50 = vmax.f32 %v1607_v38, %v1606_v0  ;;  %v2922_v0 = vld [vmem:[#allocation9 + $0x8] sm:$0xff] }
 0x4ad   : > { %v1609_v1 = vmax.f32 %v3660_v50, 0.0 }
 0x4af   : > { %v1624_v4 = vpack.c.bf16 %v1609_v1, %v1609_v1  ;;  %v1611_v5 = vrot.slane %v1609_v1, 7  ;;  %v1614_v6 = vrot.slane %v1609_v1, 1 }
 0x4b1   : > { %1839 = vmatmul.bf16.vlgmr.msrb.gmra.mxu0 %v1624_v4  ;;  %v1613_v7 = vsel %vm470_vm0, 0.0, %v1611_v5  ;;  %v1617_v54 = vsel %vm1616_vm15, %v1614_v6, 0.0 }
 0x4b2   : > { %v2721_v9 = vpack.c.bf16 %v1613_v7, %v1613_v7  ;;  %v2726_v11 = vpack.c.bf16 %v1617_v54, %v1617_v54  ;;  %v3019_v7 = vld [vmem:[%s3740_s6] ss:$0 sm:$0xff] }
 0x4b4   : > { %2722 = vmatmul.msk.bf16.vlgmr.msra.gmra.mxu3 %vm2720_vm2, %v2721_v9  ;;  %2727 = vmatmul.msk.bf16.vlgmr.msrb.gmra.mxu1 %vm3672_vm3, %v2726_v11 }
 0x4b5   : > { %2078 = vmatpush.bf16.msra.mxu3 %v2928_v53 }
 0x4b9   : > { %2079 = vmatpush.bf16.msra.mxu3 %v2927_v55 }
 0x4bd   : > { %2080 = vmatpush.bf16.msra.mxu3 %v2926_v57 }
 0x4c1   : > { %2081 = vmatpush.bf16.msra.mxu3 %v2925_v58 }
 0x4c5   : > { %2082 = vmatpush.bf16.msra.mxu3 %v2924_v59 }
 0x4c9   : > { %2083 = vmatpush.bf16.msra.mxu3 %v2923_v60 }
 0x4cd   : > { %2084 = vmatpush.bf16.msra.mxu3 %v2922_v0 }
 0x52e   : > { %v1840_v12 = vpop.f32.mrf.mxu0 }
 0x531   : > { %v1853_v13 = vpop.f32.mrf.mxu1 }
 0x536   : > { %v1842_v14 = vpop.f32.mrf.mxu0 }
 0x537   : > { %v1827_v45 = vpop.f32.mrf.mxu3 }
 0x538   : > { %v1828_v2 = vadd.f32 %v3467_v20, %v1827_v45  ;;  %v2919_v20 = vld [vmem:[#allocation8 + $0x70] sm:$0xff] }
 0x539   : > { %v1855_v15 = vpop.f32.mrf.mxu1  ;;  %1981 = vmatpush.bf16.msra.mxu1 %v2919_v20  ;;  %1996 = vmatpush.bf16.msra.mxu2 %v2919_v20 }
 0x53a   : > { %v1841_v17 = vadd.f32 %v1840_v12, %v1828_v2 }
 0x53c   : > { %v1854_v18 = vadd.f32 %v1853_v13, %v1841_v17 }
 0x53d   : > { %1982 = vmatpush.bf16.msra.mxu1 %v2918_v29  ;;  %1997 = vmatpush.bf16.msra.mxu2 %v2918_v29 }
 0x53e   : > { %v1857_v16 = vmax.f32 %v1854_v18, 0.0 }
 0x53f   : > { %v1829_v19 = vpop.f32.mrf.mxu3 }
 0x540   : > { %v1859_v21 = vrot.slane %v1857_v16, 7  ;;  %v1862_v22 = vrot.slane %v1857_v16, 1  ;;  %v1868_v23 = vpack.c.bf16 %v1857_v16, %v1857_v16 }
 0x541   : > { %1983 = vmatpush.bf16.msra.mxu1 %v2917_v30  ;;  %1998 = vmatpush.bf16.msra.mxu2 %v2917_v30 }
 0x542   : > { %v1861_v25 = vsel %vm470_vm0, 0.0, %v1859_v21  ;;  %v1864_v26 = vsel %vm1616_vm15, %v1862_v22, 0.0  ;;  %1891 = vmatmul.bf16.vlgmr.msrb.gmra.mxu3 %v1868_v23 }
 0x543   : > { %v2731_v27 = vpack.c.bf16 %v1861_v25, %v1861_v25  ;;  %v2736_v28 = vpack.c.bf16 %v1864_v26, %v1864_v26 }
 0x545   : > { %2732 = vmatmul.msk.bf16.vlgmr.msrb.gmra.mxu2 %vm2720_vm2, %v2731_v27  ;;  %2737 = vmatmul.msk.bf16.vlgmr.msra.gmra.mxu0 %vm3672_vm3, %v2736_v28 }
 0x546   : > { %1984 = vmatpush.bf16.msra.mxu1 %v2916_v31  ;;  %1999 = vmatpush.bf16.msra.mxu2 %v2916_v31 }
 0x54a   : > { %1985 = vmatpush.bf16.msra.mxu1 %v2915_v32  ;;  %2000 = vmatpush.bf16.msra.mxu2 %v2915_v32 }
 0x54e   : > { %1986 = vmatpush.bf16.msra.mxu1 %v2914_v33  ;;  %2001 = vmatpush.bf16.msra.mxu2 %v2914_v33 }
 0x552   : > { %1987 = vmatpush.bf16.msra.mxu1 %v2913_v34  ;;  %2002 = vmatpush.bf16.msra.mxu2 %v2913_v34 }
 0x5c2   : > { %v1905_v35 = vpop.f32.mrf.mxu0 }
 0x5c5   : > { %v1892_v36 = vpop.f32.mrf.mxu3 }
 0x5c8   : > { %v1879_v39 = vpop.f32.mrf.mxu2 }
 0x5c9   : > { %v1880_v41 = vadd.f32 %v3020_v40, %v1879_v39 }
 0x5ca   : > { %v1907_v43 = vpop.f32.mrf.mxu0 }
 0x5cb   : > { %v1893_v44 = vadd.f32 %v1892_v36, %v1880_v41 }
 0x5cd   : > { %v1906_v46 = vadd.f32 %v1905_v35, %v1893_v44  ;;  %v1894_v47 = vpop.f32.mrf.mxu3 }
 0x5cf   : > { %v1909_v10 = vadd.f32 %v1906_v46, %v3660_v50  ;;  %v2921_v50 = vld [vmem:[#allocation9] sm:$0xff] }
 0x5d0   : > { %v1881_v48 = vpop.f32.mrf.mxu2  ;;  %2085 = vmatpush.bf16.msra.mxu3 %v2921_v50 }
 0x5d1   : > { %1910 = vst [vmem:[#allocation2] sm:$0xf] %v1909_v10 }
 0x5d8   : > { %v1911_v37 = vld [vmem:[#allocation2] ss:$2 sm:$0x3]  ;;  %v1912_v49 = vld [vmem:[#allocation2 + $0x1] ss:$2 sm:$0x3] }
 0x5d9   : > { %v1913_v51 = vmax.f32 %v1911_v37, %v1912_v49 }
 0x5db   : > { %v1914_v52 = vmax.f32 %v1913_v51, 0.0 }
 0x5dd   : > { %v1915_v24 = vpack.c.bf16 %v1914_v52, %v1914_v52 }
 0x5df   : > { %1988 = vmatmul.bf16.vlgmr.msra.gmra.mxu1 %v1915_v24 }
 0x65c   : > { %v1989_v61 = vpop.f32.mrf.mxu1 }
 0x65d   : > { %v1990_v42 = vadd.f32 %v3020_v40, %v1989_v61 }
 0x65f   : > { %v1993_v56 = vmax.f32 %v1990_v42, 0.0 }
 0x661   : > { %v1994_v63 = vpack.c.bf16 %v1993_v56, %v1993_v56 }
 0x663   : > { %2003 = vmatmul.bf16.vlgmr.msra.gmra.mxu2 %v1994_v63 }
 0x664   : > { %v1991_v38 = vpop.f32.mrf.mxu1 }
 0x6e6   : > { %v2004_v1 = vpop.f32.mrf.mxu2 }
 0x6e7   : > { %v2005_v3 = vadd.f32 %v3020_v40, %v2004_v1 }
 0x6e9   : > { %v2008_v4 = vadd.f32 %v2005_v3, %v1913_v51 }
 0x6eb   : > { %v2009_v5 = vpack.c.bf16 %v2008_v4, %v2008_v4 }
 0x6ed   : > { %2086 = vmatmul.bf16.vlgmr.msra.gmra.mxu3 %v2009_v5 }
 0x6ee   : > { %v2006_v6 = vpop.f32.mrf.mxu2 }
 0x770   : > { %v2087_v54 = vpop.f32.mrf.mxu3 }
 0x771   : > { %v2088_v8 = vadd.f32 %v3019_v7, %v2087_v54 }
 0x773   : > { %2091 = vst [vmem:[%s348_s23] sm:$0x3] %v2088_v8 }
 0x774   : > { %3168 = shalt.err (!%p3165_p10)
}
 0x775   : > { %2951 = dma.vmem_to_hbm [thread:$0]  (%p3354_p3), %s2106_s30, 32, %s2108_s12, %s2093_s19  }
 0x778   : > { %v2089_v9 = vpop.f32.mrf.mxu3 }
 0x779 PF: > { %s2119_s15 = sand.u32 1, %s3203_s24   ;;  %p3776_p12 = scmp.ge.s32.totalorder %s3215_s27, 2 }
 0x77a   : > { %s2120_s21 = scalar_lea.sflag [#allocation5], %s2119_s15 }
 0x77b   : > { %p2968_p13 = pnand %p3776_p12, %p3298_p6 }
 0x77d   : > { %p2969_p0 = pneg %p2968_p13 }
 0x77f   : > { %3198 = dma.done.wait (%p2969_p0), %s2120_s21, 32  }
 0x780   : > { %3200 = vsyncadd (%p2969_p0), %s2120_s21, 4294967264  ;;  %p22_p5 = scmp.ge.s32.totalorder %s3336_s13, 4   ;;  %s3777_s24 = smov %s3207_s25 }
 0x781   : > { %s3778_s25 = smov %s3211_s26  ;;  %s3779_s26 = smov %s3350_s17 }
 0x782   : > { %s3780_s27 = smov %s3336_s13  ;;  %24 = sbr.rel (!%p22_p5) target bundleno = 9 (0x9), region = 108 }
 0x787   :  { %2126 = vsyncpa [#allocation4], 1 }
 0x788   :  { %2128 = vsyncpa [#allocation4 + $0x1], 1 }
 0x789   :  { %2129 = vsyncpa [#allocation7], 1 }
 0x78a   :  { %2130 = vsyncpa [#allocation10], 1 }
 0x78b   :  { %2131 = vsyncpa [#allocation5], 1 }
 0x78c   :  { %2133 = vsyncpa [#allocation5 + $0x1], 1 }

</bundles_post_ra>
